<compile_context>
chip_gen: v5e
topology: v5e:2x2
jax: 0.10.0
libtpu: 0.0.40
codegen_flags: <defaults>
</compile_context>

<pallas_src>
import numpy as np
import jax
import jax.numpy as jnp
from jax import lax
from jax.experimental import pallas as pl
from jax.experimental.pallas import tpu as pltpu


# ----------------------------- fused Pallas kernel -----------------------------

def lstm_clf_fused_kernel(ids_ref, weff_ref, whh_ref, b_ref,
                          wout_ref, bout_ref, a_ref, res_ref):
    """Fused forward for LSTM_clf.

    ids_ref  : (B, S) int32   token ids (PyTorch batch_first layout, unchanged)
    weff_ref : (V, 4H)        emb_table @ W_ih.T  (embedding folded into input proj)
    whh_ref  : (H, 4H)        W_hh.T
    b_ref    : (1, 4H)        b_ih + b_hh
    wout_ref : (H, L)         W_out.T
    bout_ref : (1, L)         b_out
    a_ref    : (B, S, H)      attention output A
    res_ref  : (B, S, L)      logits `result`
    """
    B, S, H = a_ref.shape
    V = weff_ref.shape[0]
    L = wout_ref.shape[1]
    N = B * S
    G = 4 * H

    # ---- embedding lookup fused into the input projection (gather-free) ----
    ids = ids_ref[...]                                              # (B, S) int32
    iota_v = lax.broadcasted_iota(jnp.int32, (B, S, V), 2)
    onehot = (iota_v == ids[:, :, None]).astype(jnp.float32)        # (B, S, V)
    gx = jnp.dot(onehot.reshape(N, V), weff_ref[...],
                 preferred_element_type=jnp.float32) + b_ref[...]   # (N, 4H)
    gx = gx.reshape(B, S, G)                                        # batch-major

    whh = whh_ref[...]

    # ---- LSTM recurrence, fully unrolled (PyTorch gate order i, f, g, o) ----
    # Hidden history stays in vregs (no VMEM scratch round-trip).
    # TODO(synk): drive the MXU directly (matmul_push_rhs once + matmul_acc_lhs per
    # step) to avoid re-pushing the (32,128) RHS 8 times; kept jnp.dot for safety.
    h = jnp.zeros((B, H), jnp.float32)
    c = jnp.zeros((B, H), jnp.float32)
    hs = []
    for t in range(S):                                              # static unroll
        g = gx[:, t, :] + jnp.dot(h, whh,
                                  preferred_element_type=jnp.float32)   # (B, 4H)
        sig = jax.nn.sigmoid(g)                                     # full-vreg EUP ops
        th = jnp.tanh(g)
        i_g = sig[:, 0 * H:1 * H]
        f_g = sig[:, 1 * H:2 * H]
        g_g = th[:, 2 * H:3 * H]
        o_g = sig[:, 3 * H:4 * H]
        c = f_g * c + i_g * g_g
        h = o_g * jnp.tanh(c)
        hs.append(h)

    x = jnp.stack(hs, axis=1)                                       # (B, S, H)

    # ---- output head: linear + first-occurrence argmax (tag never leaves vregs) ----
    y = (jnp.dot(x.reshape(N, H), wout_ref[...],
                 preferred_element_type=jnp.float32)
         + bout_ref[...]).reshape(B, S, L)                          # (B, S, L)
    res_ref[...] = y
    maxv = jnp.max(y, axis=-1, keepdims=True)
    lidx = lax.broadcasted_iota(jnp.int32, (B, S, L), 2)
    tag = jnp.min(jnp.where(y >= maxv, lidx, L), axis=-1)           # (B, S) int32

    # ---- attention, batched over B, ONE shared exp for both masked bands ----
    s = jnp.einsum('bqd,bkd->bqk', x, x,
                   preferred_element_type=jnp.float32)              # (B, S, S)
    # rowmax over the full row: s - rowmax <= 0, so exp never overflows; the per-band
    # shift difference cancels after normalization, so this is exactly the per-band
    # masked softmax.
    p_full = jnp.exp(s - jnp.max(s, axis=-1, keepdims=True))        # (B, S, S)
    m_e = (tag != 0)[:, None, :]                                    # (B, 1, S) key mask

    def band(mask):
        p = jnp.where(mask, p_full, 0.0)
        den = jnp.sum(p, axis=-1, keepdims=True)
        # empty band -> den == 0 -> probs forced to 0 (matches torch's empty matmul).
        inv = pl.reciprocal(jnp.where(den > 0.0, den, 1.0), approx=True)
        return p * inv

    # Ae@He + Ao@Ho == (Pe + Po) @ H  (masks are disjoint) -> one batched matmul.
    p = band(m_e) + band(jnp.logical_not(m_e))                      # (B, S, S)
    a_ref[...] = jnp.einsum('bqk,bkd->bqd', p, x,
                            preferred_element_type=jnp.float32) + x


# ----------------------------- wrapper -----------------------------

def lstm_clf_forward(ids, params):
    """Single fused Pallas forward for LSTM_clf (1 layer, unidirectional, attention)."""
    weff, whh_t, b_lstm = params["weff"], params["whh_t"], params["b_lstm"]
    wout_t, bout = params["wout_t"], params["bout"]

    B, S = ids.shape
    H = whh_t.shape[0]
    L = wout_t.shape[1]

    A, result = pl.pallas_call(
        lstm_clf_fused_kernel,
        out_shape=(jax.ShapeDtypeStruct((B, S, H), jnp.float32),
                   jax.ShapeDtypeStruct((B, S, L), jnp.float32)),
    )(ids.astype(jnp.int32), weff, whh_t, b_lstm, wout_t, bout)

    return A, result


# ----------------------------- params & reference -----------------------------

def init_params(key, vocab_size, emb_size, hidden, label_size):
    ks = jax.random.split(key, 7)
    bound = 1.0 / np.sqrt(hidden)
    emb = jax.random.normal(ks[0], (vocab_size, emb_size), jnp.float32)
    w_ih = jax.random.uniform(ks[1], (4 * hidden, emb_size), jnp.float32, -bound, bound)
    w_hh = jax.random.uniform(ks[2], (4 * hidden, hidden), jnp.float32, -bound, bound)
    b_ih = jax.random.uniform(ks[3], (4 * hidden,), jnp.float32, -bound, bound)
    b_hh = jax.random.uniform(ks[4], (4 * hidden,), jnp.float32, -bound, bound)
    w_out = jax.random.uniform(ks[5], (label_size, hidden), jnp.float32, -bound, bound)
    b_out = jax.random.uniform(ks[6], (label_size,), jnp.float32, -bound, bound)
    wih_t = jnp.asarray(w_ih.T)
    return {
        "emb": emb,
        "wih_t": wih_t,
        # Embedding folded into the input projection (static weights, done once here).
        "weff": jnp.dot(emb, wih_t),                     # (V, 4H)
        "whh_t": jnp.asarray(w_hh.T),
        "b_lstm": (b_ih + b_hh).reshape(1, 4 * hidden),
        "wout_t": jnp.asarray(w_out.T),
        "bout": b_out.reshape(1, label_size),
    }


def reference_forward(ids, params):
    """Pure-JAX reference matching the PyTorch forward semantics."""
    emb_table = params["emb"]
    wih_t, whh_t, b_lstm = params["wih_t"], params["whh_t"], params["b_lstm"]
    wout_t, bout = params["wout_t"], params["bout"]
    B, S = ids.shape
    H = whh_t.shape[0]

    emb = jnp.take(emb_table, ids, axis=0)

    def cell(carry, x_t):
        h, c = carry
        g = x_t @ wih_t + h @ whh_t + b_lstm
        i_g = jax.nn.sigmoid(g[:, :H])
        f_g = jax.nn.sigmoid(g[:, H:2 * H])
        g_g = jnp.tanh(g[:, 2 * H:3 * H])
        o_g = jax.nn.sigmoid(g[:, 3 * H:])
        c = f_g * c + i_g * g_g
        h = o_g * jnp.tanh(c)
        return (h, c), h

    (_, _), hs = lax.scan(cell,
                          (jnp.zeros((B, H), jnp.float32),
                           jnp.zeros((B, H), jnp.float32)),
                          jnp.transpose(emb, (1, 0, 2)))
    x = jnp.transpose(hs, (1, 0, 2))
    result = x @ wout_t + bout[0]
    tag = jnp.argmax(result, axis=2)

    def one(hb, tb):
        s = hb @ hb.T

        def att(mask):
            s_sel = jnp.where(mask[None, :], s, -1e30)
            smax = jnp.max(s_sel, axis=1, keepdims=True)
            p = jnp.where(mask[None, :], jnp.exp(s_sel - smax), 0.0)
            denom = jnp.sum(p, axis=1, keepdims=True)
            return (p @ hb) / jnp.where(denom > 0, denom, 1.0)

        m = tb != 0
        return att(m) + att(~m) + hb

    A = jax.vmap(one)(x, tag)
    return A, result


# ----------------------------- main -----------------------------

if __name__ == "__main__":
    vocab_size, label_size = 50, 5
    emb_size, hidden = 16, 32
    B, S = 2, 8

    key = jax.random.PRNGKey(0)
    kp, ki = jax.random.split(key)
    params = init_params(kp, vocab_size, emb_size, hidden, label_size)
    ids = jax.random.randint(ki, (B, S), 0, vocab_size, dtype=jnp.int32)

    A, result = jax.jit(lstm_clf_forward)(ids, params)
    (A, result) = jax.block_until_ready((A, result))

    A_ref, result_ref = reference_forward(ids, params)
    assert A.shape == (B, S, hidden) and result.shape == (B, S, label_size)
    np.testing.assert_allclose(np.asarray(result), np.asarray(result_ref),
                               rtol=1e-2, atol=1e-2)
    np.testing.assert_allclose(np.asarray(A), np.asarray(A_ref),
                               rtol=1e-2, atol=1e-2)
    print("KERNEL_OK")
</pallas_src>

<mosaic_0001>
module attributes {stable_mosaic.version = 11 : i64} {
  func.func @lstm_clf_fused_kernel(%arg0: memref<2x8xi32, #tpu.memory_space<vmem>>, %arg1: memref<50x128xf32, #tpu.memory_space<vmem>>, %arg2: memref<32x128xf32, #tpu.memory_space<vmem>>, %arg3: memref<1x128xf32, #tpu.memory_space<vmem>>, %arg4: memref<32x5xf32, #tpu.memory_space<vmem>>, %arg5: memref<1x5xf32, #tpu.memory_space<vmem>>, %arg6: memref<2x8x32xf32, #tpu.memory_space<vmem>>, %arg7: memref<2x8x5xf32, #tpu.memory_space<vmem>>) attributes {dimension_semantics = [], scalar_prefetch = 0 : i64, scratch_operands = 0 : i64, tpu.core_type = #tpu.core_type<tc>} {
    %c0 = arith.constant 0 : index
    %c0_0 = arith.constant 0 : index
    %0 = vector.load %arg0[%c0, %c0_0] : memref<2x8xi32, #tpu.memory_space<vmem>>, vector<2x8xi32>
    %1 = tpu.iota {dimensions = array<i32: 2>} : vector<2x8x50xi32>
    %2 = vector.shape_cast %0 : vector<2x8xi32> to vector<2x8x1xi32>
    %3 = vector.broadcast %2 : vector<2x8x1xi32> to vector<2x8x50xi32>
    %4 = arith.cmpi eq, %1, %3 : vector<2x8x50xi32>
    %5 = arith.extui %4 : vector<2x8x50xi1> to vector<2x8x50xi32>
    %6 = arith.sitofp %5 : vector<2x8x50xi32> to vector<2x8x50xf32>
    %7 = vector.shape_cast %6 : vector<2x8x50xf32> to vector<16x50xf32>
    %c0_1 = arith.constant 0 : index
    %c0_2 = arith.constant 0 : index
    %8 = vector.load %arg1[%c0_1, %c0_2] : memref<50x128xf32, #tpu.memory_space<vmem>>, vector<50x128xf32>
    %cst = arith.constant dense<0.000000e+00> : vector<16x128xf32>
    %9 = tpu.matmul %7, %8, %cst {dimension_numbers = #tpu.dot_dimension_numbers<[1], [0], [0], [1], [0, 0, 1, 1], [], []>} : vector<16x50xf32>, vector<50x128xf32>, vector<16x128xf32> -> vector<16x128xf32>
    %c0_3 = arith.constant 0 : index
    %c0_4 = arith.constant 0 : index
    %10 = vector.load %arg3[%c0_3, %c0_4] : memref<1x128xf32, #tpu.memory_space<vmem>>, vector<1x128xf32>
    %11 = vector.broadcast %10 : vector<1x128xf32> to vector<16x128xf32>
    %12 = arith.addf %9, %11 : vector<16x128xf32>
    %13 = vector.shape_cast %12 : vector<16x128xf32> to vector<2x8x128xf32>
    %c0_5 = arith.constant 0 : index
    %c0_6 = arith.constant 0 : index
    %14 = vector.load %arg2[%c0_5, %c0_6] : memref<32x128xf32, #tpu.memory_space<vmem>>, vector<32x128xf32>
    %cst_7 = arith.constant 0.000000e+00 : f32
    %15 = vector.broadcast %cst_7 : f32 to vector<2x32xf32>
    %cst_8 = arith.constant 0.000000e+00 : f32
    %16 = vector.broadcast %cst_8 : f32 to vector<2x32xf32>
    %17 = vector.extract_strided_slice %13 {offsets = [0, 0, 0], sizes = [2, 1, 128], strides = [1, 1, 1]} : vector<2x8x128xf32> to vector<2x1x128xf32>
    %18 = vector.shape_cast %17 : vector<2x1x128xf32> to vector<2x128xf32>
    %cst_9 = arith.constant dense<0.000000e+00> : vector<2x128xf32>
    %19 = tpu.matmul %15, %14, %cst_9 {dimension_numbers = #tpu.dot_dimension_numbers<[1], [0], [0], [1], [0, 0, 1, 1], [], []>} : vector<2x32xf32>, vector<32x128xf32>, vector<2x128xf32> -> vector<2x128xf32>
    %20 = arith.addf %18, %19 : vector<2x128xf32>
    %21 = arith.negf %20 : vector<2x128xf32>
    %22 = math.exp %21 : vector<2x128xf32>
    %cst_10 = arith.constant 1.000000e+00 : f32
    %23 = vector.broadcast %cst_10 : f32 to vector<2x128xf32>
    %24 = arith.addf %23, %22 : vector<2x128xf32>
    %25 = arith.divf %23, %24 : vector<2x128xf32>
    %26 = math.tanh %20 : vector<2x128xf32>
    %27 = vector.extract_strided_slice %25 {offsets = [0, 0], sizes = [2, 32], strides = [1, 1]} : vector<2x128xf32> to vector<2x32xf32>
    %28 = vector.extract_strided_slice %25 {offsets = [0, 32], sizes = [2, 32], strides = [1, 1]} : vector<2x128xf32> to vector<2x32xf32>
    %29 = vector.extract_strided_slice %26 {offsets = [0, 64], sizes = [2, 32], strides = [1, 1]} : vector<2x128xf32> to vector<2x32xf32>
    %30 = vector.extract_strided_slice %25 {offsets = [0, 96], sizes = [2, 32], strides = [1, 1]} : vector<2x128xf32> to vector<2x32xf32>
    %31 = arith.mulf %28, %16 : vector<2x32xf32>
    %32 = arith.mulf %27, %29 : vector<2x32xf32>
    %33 = arith.addf %31, %32 : vector<2x32xf32>
    %34 = math.tanh %33 : vector<2x32xf32>
    %35 = arith.mulf %30, %34 : vector<2x32xf32>
    %36 = vector.extract_strided_slice %13 {offsets = [0, 1, 0], sizes = [2, 1, 128], strides = [1, 1, 1]} : vector<2x8x128xf32> to vector<2x1x128xf32>
    %37 = vector.shape_cast %36 : vector<2x1x128xf32> to vector<2x128xf32>
    %cst_11 = arith.constant dense<0.000000e+00> : vector<2x128xf32>
    %38 = tpu.matmul %35, %14, %cst_11 {dimension_numbers = #tpu.dot_dimension_numbers<[1], [0], [0], [1], [0, 0, 1, 1], [], []>} : vector<2x32xf32>, vector<32x128xf32>, vector<2x128xf32> -> vector<2x128xf32>
    %39 = arith.addf %37, %38 : vector<2x128xf32>
    %40 = arith.negf %39 : vector<2x128xf32>
    %41 = math.exp %40 : vector<2x128xf32>
    %cst_12 = arith.constant 1.000000e+00 : f32
    %42 = vector.broadcast %cst_12 : f32 to vector<2x128xf32>
    %43 = arith.addf %42, %41 : vector<2x128xf32>
    %44 = arith.divf %42, %43 : vector<2x128xf32>
    %45 = math.tanh %39 : vector<2x128xf32>
    %46 = vector.extract_strided_slice %44 {offsets = [0, 0], sizes = [2, 32], strides = [1, 1]} : vector<2x128xf32> to vector<2x32xf32>
    %47 = vector.extract_strided_slice %44 {offsets = [0, 32], sizes = [2, 32], strides = [1, 1]} : vector<2x128xf32> to vector<2x32xf32>
    %48 = vector.extract_strided_slice %45 {offsets = [0, 64], sizes = [2, 32], strides = [1, 1]} : vector<2x128xf32> to vector<2x32xf32>
    %49 = vector.extract_strided_slice %44 {offsets = [0, 96], sizes = [2, 32], strides = [1, 1]} : vector<2x128xf32> to vector<2x32xf32>
    %50 = arith.mulf %47, %33 : vector<2x32xf32>
    %51 = arith.mulf %46, %48 : vector<2x32xf32>
    %52 = arith.addf %50, %51 : vector<2x32xf32>
    %53 = math.tanh %52 : vector<2x32xf32>
    %54 = arith.mulf %49, %53 : vector<2x32xf32>
    %55 = vector.extract_strided_slice %13 {offsets = [0, 2, 0], sizes = [2, 1, 128], strides = [1, 1, 1]} : vector<2x8x128xf32> to vector<2x1x128xf32>
    %56 = vector.shape_cast %55 : vector<2x1x128xf32> to vector<2x128xf32>
    %cst_13 = arith.constant dense<0.000000e+00> : vector<2x128xf32>
    %57 = tpu.matmul %54, %14, %cst_13 {dimension_numbers = #tpu.dot_dimension_numbers<[1], [0], [0], [1], [0, 0, 1, 1], [], []>} : vector<2x32xf32>, vector<32x128xf32>, vector<2x128xf32> -> vector<2x128xf32>
    %58 = arith.addf %56, %57 : vector<2x128xf32>
    %59 = arith.negf %58 : vector<2x128xf32>
    %60 = math.exp %59 : vector<2x128xf32>
    %cst_14 = arith.constant 1.000000e+00 : f32
    %61 = vector.broadcast %cst_14 : f32 to vector<2x128xf32>
    %62 = arith.addf %61, %60 : vector<2x128xf32>
    %63 = arith.divf %61, %62 : vector<2x128xf32>
    %64 = math.tanh %58 : vector<2x128xf32>
    %65 = vector.extract_strided_slice %63 {offsets = [0, 0], sizes = [2, 32], strides = [1, 1]} : vector<2x128xf32> to vector<2x32xf32>
    %66 = vector.extract_strided_slice %63 {offsets = [0, 32], sizes = [2, 32], strides = [1, 1]} : vector<2x128xf32> to vector<2x32xf32>
    %67 = vector.extract_strided_slice %64 {offsets = [0, 64], sizes = [2, 32], strides = [1, 1]} : vector<2x128xf32> to vector<2x32xf32>
    %68 = vector.extract_strided_slice %63 {offsets = [0, 96], sizes = [2, 32], strides = [1, 1]} : vector<2x128xf32> to vector<2x32xf32>
    %69 = arith.mulf %66, %52 : vector<2x32xf32>
    %70 = arith.mulf %65, %67 : vector<2x32xf32>
    %71 = arith.addf %69, %70 : vector<2x32xf32>
    %72 = math.tanh %71 : vector<2x32xf32>
    %73 = arith.mulf %68, %72 : vector<2x32xf32>
    %74 = vector.extract_strided_slice %13 {offsets = [0, 3, 0], sizes = [2, 1, 128], strides = [1, 1, 1]} : vector<2x8x128xf32> to vector<2x1x128xf32>
    %75 = vector.shape_cast %74 : vector<2x1x128xf32> to vector<2x128xf32>
    %cst_15 = arith.constant dense<0.000000e+00> : vector<2x128xf32>
    %76 = tpu.matmul %73, %14, %cst_15 {dimension_numbers = #tpu.dot_dimension_numbers<[1], [0], [0], [1], [0, 0, 1, 1], [], []>} : vector<2x32xf32>, vector<32x128xf32>, vector<2x128xf32> -> vector<2x128xf32>
    %77 = arith.addf %75, %76 : vector<2x128xf32>
    %78 = arith.negf %77 : vector<2x128xf32>
    %79 = math.exp %78 : vector<2x128xf32>
    %cst_16 = arith.constant 1.000000e+00 : f32
    %80 = vector.broadcast %cst_16 : f32 to vector<2x128xf32>
    %81 = arith.addf %80, %79 : vector<2x128xf32>
    %82 = arith.divf %80, %81 : vector<2x128xf32>
    %83 = math.tanh %77 : vector<2x128xf32>
    %84 = vector.extract_strided_slice %82 {offsets = [0, 0], sizes = [2, 32], strides = [1, 1]} : vector<2x128xf32> to vector<2x32xf32>
    %85 = vector.extract_strided_slice %82 {offsets = [0, 32], sizes = [2, 32], strides = [1, 1]} : vector<2x128xf32> to vector<2x32xf32>
    %86 = vector.extract_strided_slice %83 {offsets = [0, 64], sizes = [2, 32], strides = [1, 1]} : vector<2x128xf32> to vector<2x32xf32>
    %87 = vector.extract_strided_slice %82 {offsets = [0, 96], sizes = [2, 32], strides = [1, 1]} : vector<2x128xf32> to vector<2x32xf32>
    %88 = arith.mulf %85, %71 : vector<2x32xf32>
    %89 = arith.mulf %84, %86 : vector<2x32xf32>
    %90 = arith.addf %88, %89 : vector<2x32xf32>
    %91 = math.tanh %90 : vector<2x32xf32>
    %92 = arith.mulf %87, %91 : vector<2x32xf32>
    %93 = vector.extract_strided_slice %13 {offsets = [0, 4, 0], sizes = [2, 1, 128], strides = [1, 1, 1]} : vector<2x8x128xf32> to vector<2x1x128xf32>
    %94 = vector.shape_cast %93 : vector<2x1x128xf32> to vector<2x128xf32>
    %cst_17 = arith.constant dense<0.000000e+00> : vector<2x128xf32>
    %95 = tpu.matmul %92, %14, %cst_17 {dimension_numbers = #tpu.dot_dimension_numbers<[1], [0], [0], [1], [0, 0, 1, 1], [], []>} : vector<2x32xf32>, vector<32x128xf32>, vector<2x128xf32> -> vector<2x128xf32>
    %96 = arith.addf %94, %95 : vector<2x128xf32>
    %97 = arith.negf %96 : vector<2x128xf32>
    %98 = math.exp %97 : vector<2x128xf32>
    %cst_18 = arith.constant 1.000000e+00 : f32
    %99 = vector.broadcast %cst_18 : f32 to vector<2x128xf32>
    %100 = arith.addf %99, %98 : vector<2x128xf32>
    %101 = arith.divf %99, %100 : vector<2x128xf32>
    %102 = math.tanh %96 : vector<2x128xf32>
    %103 = vector.extract_strided_slice %101 {offsets = [0, 0], sizes = [2, 32], strides = [1, 1]} : vector<2x128xf32> to vector<2x32xf32>
    %104 = vector.extract_strided_slice %101 {offsets = [0, 32], sizes = [2, 32], strides = [1, 1]} : vector<2x128xf32> to vector<2x32xf32>
    %105 = vector.extract_strided_slice %102 {offsets = [0, 64], sizes = [2, 32], strides = [1, 1]} : vector<2x128xf32> to vector<2x32xf32>
    %106 = vector.extract_strided_slice %101 {offsets = [0, 96], sizes = [2, 32], strides = [1, 1]} : vector<2x128xf32> to vector<2x32xf32>
    %107 = arith.mulf %104, %90 : vector<2x32xf32>
    %108 = arith.mulf %103, %105 : vector<2x32xf32>
    %109 = arith.addf %107, %108 : vector<2x32xf32>
    %110 = math.tanh %109 : vector<2x32xf32>
    %111 = arith.mulf %106, %110 : vector<2x32xf32>
    %112 = vector.extract_strided_slice %13 {offsets = [0, 5, 0], sizes = [2, 1, 128], strides = [1, 1, 1]} : vector<2x8x128xf32> to vector<2x1x128xf32>
    %113 = vector.shape_cast %112 : vector<2x1x128xf32> to vector<2x128xf32>
    %cst_19 = arith.constant dense<0.000000e+00> : vector<2x128xf32>
    %114 = tpu.matmul %111, %14, %cst_19 {dimension_numbers = #tpu.dot_dimension_numbers<[1], [0], [0], [1], [0, 0, 1, 1], [], []>} : vector<2x32xf32>, vector<32x128xf32>, vector<2x128xf32> -> vector<2x128xf32>
    %115 = arith.addf %113, %114 : vector<2x128xf32>
    %116 = arith.negf %115 : vector<2x128xf32>
    %117 = math.exp %116 : vector<2x128xf32>
    %cst_20 = arith.constant 1.000000e+00 : f32
    %118 = vector.broadcast %cst_20 : f32 to vector<2x128xf32>
    %119 = arith.addf %118, %117 : vector<2x128xf32>
    %120 = arith.divf %118, %119 : vector<2x128xf32>
    %121 = math.tanh %115 : vector<2x128xf32>
    %122 = vector.extract_strided_slice %120 {offsets = [0, 0], sizes = [2, 32], strides = [1, 1]} : vector<2x128xf32> to vector<2x32xf32>
    %123 = vector.extract_strided_slice %120 {offsets = [0, 32], sizes = [2, 32], strides = [1, 1]} : vector<2x128xf32> to vector<2x32xf32>
    %124 = vector.extract_strided_slice %121 {offsets = [0, 64], sizes = [2, 32], strides = [1, 1]} : vector<2x128xf32> to vector<2x32xf32>
    %125 = vector.extract_strided_slice %120 {offsets = [0, 96], sizes = [2, 32], strides = [1, 1]} : vector<2x128xf32> to vector<2x32xf32>
    %126 = arith.mulf %123, %109 : vector<2x32xf32>
    %127 = arith.mulf %122, %124 : vector<2x32xf32>
    %128 = arith.addf %126, %127 : vector<2x32xf32>
    %129 = math.tanh %128 : vector<2x32xf32>
    %130 = arith.mulf %125, %129 : vector<2x32xf32>
    %131 = vector.extract_strided_slice %13 {offsets = [0, 6, 0], sizes = [2, 1, 128], strides = [1, 1, 1]} : vector<2x8x128xf32> to vector<2x1x128xf32>
    %132 = vector.shape_cast %131 : vector<2x1x128xf32> to vector<2x128xf32>
    %cst_21 = arith.constant dense<0.000000e+00> : vector<2x128xf32>
    %133 = tpu.matmul %130, %14, %cst_21 {dimension_numbers = #tpu.dot_dimension_numbers<[1], [0], [0], [1], [0, 0, 1, 1], [], []>} : vector<2x32xf32>, vector<32x128xf32>, vector<2x128xf32> -> vector<2x128xf32>
    %134 = arith.addf %132, %133 : vector<2x128xf32>
    %135 = arith.negf %134 : vector<2x128xf32>
    %136 = math.exp %135 : vector<2x128xf32>
    %cst_22 = arith.constant 1.000000e+00 : f32
    %137 = vector.broadcast %cst_22 : f32 to vector<2x128xf32>
    %138 = arith.addf %137, %136 : vector<2x128xf32>
    %139 = arith.divf %137, %138 : vector<2x128xf32>
    %140 = math.tanh %134 : vector<2x128xf32>
    %141 = vector.extract_strided_slice %139 {offsets = [0, 0], sizes = [2, 32], strides = [1, 1]} : vector<2x128xf32> to vector<2x32xf32>
    %142 = vector.extract_strided_slice %139 {offsets = [0, 32], sizes = [2, 32], strides = [1, 1]} : vector<2x128xf32> to vector<2x32xf32>
    %143 = vector.extract_strided_slice %140 {offsets = [0, 64], sizes = [2, 32], strides = [1, 1]} : vector<2x128xf32> to vector<2x32xf32>
    %144 = vector.extract_strided_slice %139 {offsets = [0, 96], sizes = [2, 32], strides = [1, 1]} : vector<2x128xf32> to vector<2x32xf32>
    %145 = arith.mulf %142, %128 : vector<2x32xf32>
    %146 = arith.mulf %141, %143 : vector<2x32xf32>
    %147 = arith.addf %145, %146 : vector<2x32xf32>
    %148 = math.tanh %147 : vector<2x32xf32>
    %149 = arith.mulf %144, %148 : vector<2x32xf32>
    %150 = vector.extract_strided_slice %13 {offsets = [0, 7, 0], sizes = [2, 1, 128], strides = [1, 1, 1]} : vector<2x8x128xf32> to vector<2x1x128xf32>
    %151 = vector.shape_cast %150 : vector<2x1x128xf32> to vector<2x128xf32>
    %cst_23 = arith.constant dense<0.000000e+00> : vector<2x128xf32>
    %152 = tpu.matmul %149, %14, %cst_23 {dimension_numbers = #tpu.dot_dimension_numbers<[1], [0], [0], [1], [0, 0, 1, 1], [], []>} : vector<2x32xf32>, vector<32x128xf32>, vector<2x128xf32> -> vector<2x128xf32>
    %153 = arith.addf %151, %152 : vector<2x128xf32>
    %154 = arith.negf %153 : vector<2x128xf32>
    %155 = math.exp %154 : vector<2x128xf32>
    %cst_24 = arith.constant 1.000000e+00 : f32
    %156 = vector.broadcast %cst_24 : f32 to vector<2x128xf32>
    %157 = arith.addf %156, %155 : vector<2x128xf32>
    %158 = arith.divf %156, %157 : vector<2x128xf32>
    %159 = math.tanh %153 : vector<2x128xf32>
    %160 = vector.extract_strided_slice %158 {offsets = [0, 0], sizes = [2, 32], strides = [1, 1]} : vector<2x128xf32> to vector<2x32xf32>
    %161 = vector.extract_strided_slice %158 {offsets = [0, 32], sizes = [2, 32], strides = [1, 1]} : vector<2x128xf32> to vector<2x32xf32>
    %162 = vector.extract_strided_slice %159 {offsets = [0, 64], sizes = [2, 32], strides = [1, 1]} : vector<2x128xf32> to vector<2x32xf32>
    %163 = vector.extract_strided_slice %158 {offsets = [0, 96], sizes = [2, 32], strides = [1, 1]} : vector<2x128xf32> to vector<2x32xf32>
    %164 = arith.mulf %161, %147 : vector<2x32xf32>
    %165 = arith.mulf %160, %162 : vector<2x32xf32>
    %166 = arith.addf %164, %165 : vector<2x32xf32>
    %167 = math.tanh %166 : vector<2x32xf32>
    %168 = arith.mulf %163, %167 : vector<2x32xf32>
    %169 = vector.shape_cast %35 : vector<2x32xf32> to vector<2x1x32xf32>
    %170 = vector.shape_cast %54 : vector<2x32xf32> to vector<2x1x32xf32>
    %171 = vector.shape_cast %73 : vector<2x32xf32> to vector<2x1x32xf32>
    %172 = vector.shape_cast %92 : vector<2x32xf32> to vector<2x1x32xf32>
    %173 = vector.shape_cast %111 : vector<2x32xf32> to vector<2x1x32xf32>
    %174 = vector.shape_cast %130 : vector<2x32xf32> to vector<2x1x32xf32>
    %175 = vector.shape_cast %149 : vector<2x32xf32> to vector<2x1x32xf32>
    %176 = vector.shape_cast %168 : vector<2x32xf32> to vector<2x1x32xf32>
    %177 = tpu.concatenate %169, %170, %171, %172, %173, %174, %175, %176 in 1 : vector<2x1x32xf32>, vector<2x1x32xf32>, vector<2x1x32xf32>, vector<2x1x32xf32>, vector<2x1x32xf32>, vector<2x1x32xf32>, vector<2x1x32xf32>, vector<2x1x32xf32> -> vector<2x8x32xf32>
    %178 = vector.shape_cast %177 : vector<2x8x32xf32> to vector<16x32xf32>
    %c0_25 = arith.constant 0 : index
    %c0_26 = arith.constant 0 : index
    %179 = vector.load %arg4[%c0_25, %c0_26] : memref<32x5xf32, #tpu.memory_space<vmem>>, vector<32x5xf32>
    %cst_27 = arith.constant dense<0.000000e+00> : vector<16x5xf32>
    %180 = tpu.matmul %178, %179, %cst_27 {dimension_numbers = #tpu.dot_dimension_numbers<[1], [0], [0], [1], [0, 0, 1, 1], [], []>} : vector<16x32xf32>, vector<32x5xf32>, vector<16x5xf32> -> vector<16x5xf32>
    %c0_28 = arith.constant 0 : index
    %c0_29 = arith.constant 0 : index
    %181 = vector.load %arg5[%c0_28, %c0_29] : memref<1x5xf32, #tpu.memory_space<vmem>>, vector<1x5xf32>
    %182 = vector.broadcast %181 : vector<1x5xf32> to vector<16x5xf32>
    %183 = arith.addf %180, %182 : vector<16x5xf32>
    %184 = vector.shape_cast %183 : vector<16x5xf32> to vector<2x8x5xf32>
    %c0_30 = arith.constant 0 : index
    %c0_31 = arith.constant 0 : index
    %c0_32 = arith.constant 0 : index
    %185 = vector.load %arg7[%c0_30, %c0_31, %c0_32] : memref<2x8x5xf32, #tpu.memory_space<vmem>>, vector<2x8x5xf32>
    tpu.vector_store %arg7[%c0_30, %c0_31, %c0_32], %184 {strides = array<i32>} : memref<2x8x5xf32, #tpu.memory_space<vmem>>, vector<2x8x5xf32>,
    %cst_33 = arith.constant dense<0xFF800000> : vector<2x8xf32>
    %186 = vector.multi_reduction <maximumf>, %184, %cst_33 [2] : vector<2x8x5xf32> to vector<2x8xf32>
    %187 = vector.shape_cast %186 : vector<2x8xf32> to vector<2x8x1xf32>
    %188 = tpu.iota {dimensions = array<i32: 2>} : vector<2x8x5xi32>
    %189 = vector.broadcast %187 : vector<2x8x1xf32> to vector<2x8x5xf32>
    %190 = arith.cmpf oge, %184, %189 : vector<2x8x5xf32>
    %c5_i32 = arith.constant 5 : i32
    %191 = vector.broadcast %c5_i32 : i32 to vector<2x8x5xi32>
    %192 = arith.select %190, %188, %191 : vector<2x8x5xi1>, vector<2x8x5xi32>
    %cst_34 = arith.constant dense<2147483647> : vector<2x8xi32>
    %193 = vector.multi_reduction <minsi>, %192, %cst_34 [2] : vector<2x8x5xi32> to vector<2x8xi32>
    "tpu.trace_start"() <{level = 10 : i32, message = "bqd,bkd->bqk"}> : () -> ()
    %cst_35 = arith.constant dense<0.000000e+00> : vector<2x8x8xf32>
    %194 = tpu.matmul %177, %177, %cst_35 {dimension_numbers = #tpu.dot_dimension_numbers<[2], [2], [1], [1], [0, 0, 0, 1, 1, 1], [0], [0]>} : vector<2x8x32xf32>, vector<2x8x32xf32>, vector<2x8x8xf32> -> vector<2x8x8xf32>
    "tpu.trace_stop"() : () -> ()
    %cst_36 = arith.constant dense<0xFF800000> : vector<2x8xf32>
    %195 = vector.multi_reduction <maximumf>, %194, %cst_36 [2] : vector<2x8x8xf32> to vector<2x8xf32>
    %196 = vector.shape_cast %195 : vector<2x8xf32> to vector<2x8x1xf32>
    %197 = vector.broadcast %196 : vector<2x8x1xf32> to vector<2x8x8xf32>
    %198 = arith.subf %194, %197 : vector<2x8x8xf32>
    %199 = math.exp %198 : vector<2x8x8xf32>
    %c0_i32 = arith.constant 0 : i32
    %200 = vector.broadcast %c0_i32 : i32 to vector<2x8xi32>
    %201 = arith.cmpi ne, %193, %200 : vector<2x8xi32>
    %202 = vector.shape_cast %201 : vector<2x8xi1> to vector<2x1x8xi1>
    %cst_37 = arith.constant 0.000000e+00 : f32
    %203 = vector.shape_cast %202 : vector<2x1x8xi1> to vector<2x1x8xi1>
    %204 = vector.broadcast %203 : vector<2x1x8xi1> to vector<2x8x8xi1>
    %205 = vector.broadcast %cst_37 : f32 to vector<2x8x8xf32>
    %206 = arith.select %204, %199, %205 : vector<2x8x8xi1>, vector<2x8x8xf32>
    %cst_38 = arith.constant dense<0.000000e+00> : vector<2x8xf32>
    %207 = vector.multi_reduction <add>, %206, %cst_38 [2] : vector<2x8x8xf32> to vector<2x8xf32>
    %208 = vector.shape_cast %207 : vector<2x8xf32> to vector<2x8x1xf32>
    %cst_39 = arith.constant 0.000000e+00 : f32
    %209 = vector.broadcast %cst_39 : f32 to vector<2x8x1xf32>
    %210 = arith.cmpf ogt, %208, %209 : vector<2x8x1xf32>
    %cst_40 = arith.constant 1.000000e+00 : f32
    %211 = vector.broadcast %cst_40 : f32 to vector<2x8x1xf32>
    %212 = arith.select %210, %208, %211 : vector<2x8x1xi1>, vector<2x8x1xf32>
    %213 = tpu.reciprocal %212 {approx = true} : vector<2x8x1xf32> -> vector<2x8x1xf32>
    %214 = vector.broadcast %213 : vector<2x8x1xf32> to vector<2x8x8xf32>
    %215 = arith.mulf %206, %214 : vector<2x8x8xf32>
    %cst_41 = arith.constant dense<true> : vector<2x1x8xi1>
    %216 = arith.xori %202, %cst_41 : vector<2x1x8xi1>
    %cst_42 = arith.constant 0.000000e+00 : f32
    %217 = vector.shape_cast %216 : vector<2x1x8xi1> to vector<2x1x8xi1>
    %218 = vector.broadcast %217 : vector<2x1x8xi1> to vector<2x8x8xi1>
    %219 = vector.broadcast %cst_42 : f32 to vector<2x8x8xf32>
    %220 = arith.select %218, %199, %219 : vector<2x8x8xi1>, vector<2x8x8xf32>
    %cst_43 = arith.constant dense<0.000000e+00> : vector<2x8xf32>
    %221 = vector.multi_reduction <add>, %220, %cst_43 [2] : vector<2x8x8xf32> to vector<2x8xf32>
    %222 = vector.shape_cast %221 : vector<2x8xf32> to vector<2x8x1xf32>
    %cst_44 = arith.constant 0.000000e+00 : f32
    %223 = vector.broadcast %cst_44 : f32 to vector<2x8x1xf32>
    %224 = arith.cmpf ogt, %222, %223 : vector<2x8x1xf32>
    %cst_45 = arith.constant 1.000000e+00 : f32
    %225 = vector.broadcast %cst_45 : f32 to vector<2x8x1xf32>
    %226 = arith.select %224, %222, %225 : vector<2x8x1xi1>, vector<2x8x1xf32>
    %227 = tpu.reciprocal %226 {approx = true} : vector<2x8x1xf32> -> vector<2x8x1xf32>
    %228 = vector.broadcast %227 : vector<2x8x1xf32> to vector<2x8x8xf32>
    %229 = arith.mulf %220, %228 : vector<2x8x8xf32>
    %230 = arith.addf %215, %229 : vector<2x8x8xf32>
    "tpu.trace_start"() <{level = 10 : i32, message = "bqk,bkd->bqd"}> : () -> ()
    %cst_46 = arith.constant dense<0.000000e+00> : vector<2x8x32xf32>
    %231 = tpu.matmul %230, %177, %cst_46 {dimension_numbers = #tpu.dot_dimension_numbers<[2], [1], [1], [2], [0, 0, 0, 1, 1, 2], [0], [0]>} : vector<2x8x8xf32>, vector<2x8x32xf32>, vector<2x8x32xf32> -> vector<2x8x32xf32>
    "tpu.trace_stop"() : () -> ()
    %232 = arith.addf %231, %177 : vector<2x8x32xf32>
    %c0_47 = arith.constant 0 : index
    %c0_48 = arith.constant 0 : index
    %c0_49 = arith.constant 0 : index
    %233 = vector.load %arg6[%c0_47, %c0_48, %c0_49] : memref<2x8x32xf32, #tpu.memory_space<vmem>>, vector<2x8x32xf32>
    tpu.vector_store %arg6[%c0_47, %c0_48, %c0_49], %232 {strides = array<i32>} : memref<2x8x32xf32, #tpu.memory_space<vmem>>, vector<2x8x32xf32>,
    return
  }
}

</mosaic_0001>

<bundles_post_ra>
// kernel: lstm_clf_forward.1
= control target key start
LH: loop header
LB: loop body
LE: loop exit
PB: predicated region body
PF: predicated region fallthrough
CT: control target
= control target key end

     0   :  { %13 = vsyncpa [#allocation3], 0  ;;  %s2775_s0 = inlined_call_operand.vmem [shape: s32[2,8], index: 0, kind: input, shape index: {}]   ;;  %s2776_s1 = inlined_call_operand.hbm [shape: f32[50,128], index: 1, kind: input, shape index: {}]   ;;  %s2777_s2 = inlined_call_operand.vmem [shape: f32[32,128], index: 2, kind: input, shape index: {}]   ;;  %s2778_s3 = inlined_call_operand.vmem [shape: f32[1,128], index: 3, kind: input, shape index: {}]   ;;  %s2779_s4 = inlined_call_operand.vmem [shape: f32[32,5], index: 4, kind: input, shape index: {}]   ;;  %s2780_s5 = inlined_call_operand.vmem [shape: f32[1,5], index: 5, kind: input, shape index: {}]   ;;  %s2781_s6 = inlined_call_operand.hbm [shape: f32[2,8,32], index: 6, kind: output, shape index: {0}]   ;;  %s2782_s7 = inlined_call_operand.vmem [shape: f32[2,8,5], index: 7, kind: output, shape index: {1}]  }
   0x1   :  { %14 = vsyncpa [#allocation4], 0  ;;  %s21_s26 = sshll.u32 %s2776_s1, 4  ;;  %s2107_s27 = smov [#allocation2]   ;;  %s22_s26 = int_to_ptr.hbm [resolvable:$true] %s21_s26 }
   0x2   :  { %s23_s28 = sshll.u32 %s2107_s27, 4  ;;  %s2108_s29 = smov 128   ;;  %s24_s28 = int_to_ptr.vmem [resolvable:$true] %s23_s28 }
   0x3   :  { %s2109_s30 = smov 8  }
   0x4   :  { %29 = dma.hbm_to_vmem [thread:$0]  %s22_s26, 896, %s24_s28, [#allocation3], %s2108_s29, %s2108_s29, %s2109_s30  }
   0x5   :  { %2103 = dma.done.wait [#allocation3], 896  }
   0x6   :  { %2104 = vsyncadd [#allocation3], 4294966400  ;;  %v43_v0 = vlaneseq  ;;  %vm83_vm0 = vcmask 1041408   ;;  %v42_v2 = vld [vmem:[%s2775_s0] sm:$0x3]  ;;  %v70_v4 = vld [vmem:[#allocation2 + $0x28] sm:$0xff] }
   0x7   :  { %v71_v3 = vld [vmem:[#allocation2 + $0x30] sm:$0x3]  ;;  %v45_v5 = vperm.slane %v42_v2, 0  ;;  %v69_v6 = vld [vmem:[#allocation2 + $0x20] sm:$0xff]  ;;  %v2169_v7 = vld [vmem:[%s2777_s2 + $0x18] sm:$0xff]  ;;  %v52_v12 = vperm.slane %v42_v2, 1 }
   0x8   :  { %v47_v1 = vshrl.u32 %v43_v0, 7  ;;  %1864 = vmatpush.msk.msra.mxu0 %vm83_vm0, %v71_v3  ;;  %130 = vmatpush.msra.mxu1 %v2169_v7  ;;  %v2175_v8 = vld [vmem:[%s2777_s2 + $0x10] sm:$0xff]  ;;  %v68_v9 = vld [vmem:[#allocation2 + $0x18] sm:$0xff]  ;;  %v66_v11 = vld [vmem:[#allocation2 + $0x8] sm:$0xff]  ;;  %v2110_v16 = vmov 0.0   ;;  %v2214_v17 = vand.u32 127, %v43_v0 }
   0x9   :  { %239 = vmatpush.msra.mxu2 %v2169_v7  ;;  %353 = vmatpush.msra.mxu3 %v2169_v7  ;;  %v67_v10 = vld [vmem:[#allocation2 + $0x10] sm:$0xff]  ;;  %v65_v13 = vld [vmem:[#allocation2] sm:$0xff]  ;;  %v2185_v14 = vld [vmem:[%s2777_s2 + $0x8] sm:$0xff]  ;;  %vm76_vm1 = vcmask 408576   ;;  %s2111_s17 = smov 64   ;;  %vm221_vm12 = vcmask 1041409  }
   0xa   :  { %1907 = vset.pattern.permute.xlu0 %v47_v1  ;;  %1909 = vset.pattern.permute.xlu2 %v47_v1  ;;  %v2191_v15 = vld [vmem:[%s2777_s2] sm:$0xff]  ;;  %vm114_vm13 = vcmask 261120   ;;  %s1845_s11 = sshll.u32 %s2781_s6, 4  ;;  %s1846_s11 = int_to_ptr.hbm [resolvable:$true] %s1845_s11 }
   0xb   :  { %1908 = vset.pattern.permute.xlu1 %v47_v1  ;;  %97 = vmatpush.msra.mxu0 %v70_v4  ;;  %v1913_v24 = vld [vmem:[%s2778_s3] ss:$0 sm:$0xff]  ;;  %s2112_s3 = smov 32  }
   0xc   :  { %131 = vmatpush.msra.mxu1 %v2175_v8  ;;  %240 = vmatpush.msra.mxu2 %v2175_v8 }
   0xd   :  { %98 = vmatpush.msra.mxu0 %v69_v6  ;;  %354 = vmatpush.msra.mxu3 %v2175_v8 }
   0xe   :  { %132 = vmatpush.msra.mxu1 %v2185_v14  ;;  %241 = vmatpush.msra.mxu2 %v2185_v14 }
   0xf   :  { %99 = vmatpush.msra.mxu0 %v68_v9  ;;  %355 = vmatpush.msra.mxu3 %v2185_v14 }
  0x10   :  { %133 = vmatpush.msra.mxu1 %v2191_v15  ;;  %242 = vmatpush.msra.mxu2 %v2191_v15 }
  0x11   :  { %100 = vmatpush.msra.mxu0 %v67_v10  ;;  %134 = vmatmul.f32.vlgmr.msra.gmra.mxu1 %v2110_v16 }
  0x12   :  { %50 = vperm.xlu0 %1907, %v45_v5   ;;  %356 = vmatpush.msra.mxu3 %v2191_v15 }
  0x13   :  { %101 = vmatpush.msra.mxu0 %v66_v11  ;;  %469 = vmatpush.msrb.mxu1 %v2169_v7 }
  0x14   :  { %585 = vmatpush.msrb.mxu2 %v2169_v7  ;;  %701 = vmatpush.msrb.mxu3 %v2169_v7 }
  0x15   :  { %102 = vmatpush.msra.mxu0 %v65_v13  ;;  %470 = vmatpush.msrb.mxu1 %v2175_v8 }
  0x16   :  { %586 = vmatpush.msrb.mxu2 %v2175_v8  ;;  %702 = vmatpush.msrb.mxu3 %v2175_v8 }
  0x17   :  { %471 = vmatpush.msrb.mxu1 %v2185_v14 }
  0x18   :  { %587 = vmatpush.msrb.mxu2 %v2185_v14  ;;  %703 = vmatpush.msrb.mxu3 %v2185_v14 }
  0x19   :  { %472 = vmatpush.msrb.mxu1 %v2191_v15 }
  0x1a   :  { %57 = vperm.xlu0 %1907, %v52_v12   ;;  %588 = vmatpush.msrb.mxu2 %v2191_v15 }
  0x1b   :  { %704 = vmatpush.msrb.mxu3 %v2191_v15  ;;  %817 = vmatpush.msra.mxu1 %v2169_v7 }
  0x1d   :  { %818 = vmatpush.msra.mxu1 %v2175_v8 }
  0x1f   :  { %819 = vmatpush.msra.mxu1 %v2185_v14 }
  0x21   :  { %820 = vmatpush.msra.mxu1 %v2191_v15 }
  0x84   :  { %v51_v18 = vpop.permute.xlu0 %50 }
  0x85   :  { %vm59_vm2 = vcmp.eq.s32.totalorder %v2214_v17, %v51_v18 }
  0x86   :  { %v1862_v19 = vsel %vm59_vm2, 1.0, %v2110_v16 }
  0x87   :  { %1865 = vmatmul.msk.f32.vlgmr.msra.gmra.mxu0 %vm76_vm1, %v1862_v19 }
  0x8c   :  { %v58_v20 = vpop.permute.xlu0 %57 }
  0x8d   :  { %vm60_vm3 = vcmp.eq.s32.totalorder %v2214_v17, %v58_v20 }
  0x8e   :  { %v1863_v21 = vsel %vm60_vm3, 1.0, %v2110_v16  ;;  %v135_v23 = vpop.f32.mrf.mxu1 }
  0x8f   :  { %1866 = vmatmul.msk.f32.gmra.mxu0 %vm76_vm1, %v1863_v21  ;;  %v139_v25 = vrot.slane %v135_v23, 1 }
 0x104   :  { %v104_v22 = vpop.f32.mrf.mxu0 }
 0x105   :  { %v2224_v29 = vadd.f32 %v1913_v24, %v104_v22 }
 0x107   :  { %v142_v30 = vadd.f32 %v135_v23, %v2224_v29 }
 0x109   :  { %v1867_v34 = vmul.f32 -1.442695, %v142_v30 }
 0x10c   :  { %v107_v26 = vpop.f32.mrf.mxu0 }
 0x10d   :  { %v2221_v27 = vadd.f32 %v1913_v24, %v107_v26 }
 0x10f   :  { %v143_v28 = vadd.f32 %v139_v25, %v2221_v27 }
 0x111   :  { %1915 = vtanh.f32 %v143_v28  ;;  %v1868_v33 = vmul.f32 -1.442695, %v143_v28 }
 0x112   :  { %1917 = vtanh.f32 %v142_v30 }
 0x113   :  { %1919 = vpow2.f32 %v1868_v33 }
 0x114   :  { %1921 = vpow2.f32 %v1867_v34 }
 0x117   :  { %v1916_v31 = vpop.eup %1915 }
 0x118   :  { %190 = vrot.lane.b32.xlu1 %v1916_v31, %s2111_s17  ;;  %v1918_v32 = vpop.eup %1917 }
 0x119   :  { %v1920_v35 = vpop.eup %1919 }
 0x11a   :  { %v151_v36 = vadd.f32 1.0, %v1920_v35  ;;  %v1922_v37 = vpop.eup %1921 }
 0x11b   :  { %v150_v38 = vadd.f32 1.0, %v1922_v37 }
 0x11c   :  { %1923 = vrcp.f32 %v151_v36  ;;  %v178_v47 = vand.u32 2147483648, %v151_v36  ;;  %vm172_vm5 = vweird.f32 %v151_v36  ;;  %v176_v48 = vand.u32 2147483647, %v151_v36 }
 0x11d   :  { %1925 = vrcp.f32 %v150_v38  ;;  %v163_v56 = vand.u32 2147483648, %v150_v38  ;;  %vm157_vm9 = vweird.f32 %v150_v38  ;;  %v161_v57 = vand.u32 2147483647, %v150_v38 }
 0x11e   :  { %v179_v51 = vor.u32 1.1754944e-38, %v178_v47  ;;  %vm177_vm7 = vcmp.eq.f32.partialorder %v176_v48, 8.507059e+37 }
 0x11f   :  { %v164_v59 = vor.u32 1.1754944e-38, %v163_v56  ;;  %vm162_vm11 = vcmp.eq.f32.partialorder %v161_v57, 8.507059e+37 }
 0x120   :  { %188 = vrot.lane.b32.xlu1 %v1918_v32, %s2111_s17 }
 0x122   :  { %v1924_v39 = vpop.eup %1923 }
 0x123   :  { %v168_v40 = vmul.f32 %v1924_v39, %v151_v36  ;;  %v1926_v42 = vpop.eup %1925  ;;  %vm173_vm4 = vweird.f32 %v1924_v39 }
 0x124   :  { %v153_v44 = vmul.f32 %v1926_v42, %v150_v38  ;;  %vm174_vm6 = vmor %vm172_vm5, %vm173_vm4  ;;  %vm158_vm8 = vweird.f32 %v1926_v42 }
 0x125   :  { %v169_v41 = vsub.f32 1.0, %v168_v40  ;;  %vm159_vm10 = vmor %vm157_vm9, %vm158_vm8 }
 0x126   :  { %v154_v46 = vsub.f32 1.0, %v153_v44 }
 0x127   :  { %v170_v43 = vmul.f32 %v1924_v39, %v169_v41 }
 0x128   :  { %v155_v50 = vmul.f32 %v1926_v42, %v154_v46 }
 0x129   :  { %v171_v45 = vadd.f32 %v1924_v39, %v170_v43 }
 0x12a   :  { %v156_v55 = vadd.f32 %v1926_v42, %v155_v50 }
 0x12b   :  { %v175_v49 = vsel %vm174_vm6, %v1924_v39, %v171_v45 }
 0x12c   :  { %v180_v53 = vsel %vm177_vm7, %v179_v51, %v175_v49  ;;  %v160_v58 = vsel %vm159_vm10, %v1926_v42, %v156_v55 }
 0x12d   :  { %v165_v60 = vsel %vm162_vm11, %v164_v59, %v160_v58  ;;  %v185_v63 = vmul.f32 0.0, %v180_v53 }
 0x12e   :  { %v184_v2 = vmul.f32 0.0, %v165_v60 }
 0x18a   :  { %v191_v52 = vpop.permute.xlu1 %190 }
 0x18b   :  { %v195_v54 = vmul.f32 %v191_v52, %v180_v53 }
 0x18d   :  { %200 = vrot.lane.b32.xlu2 %v195_v54, %s2112_s3 }
 0x192   :  { %v189_v61 = vpop.permute.xlu1 %188 }
 0x193   :  { %v194_v62 = vmul.f32 %v189_v61, %v165_v60 }
 0x195   :  { %198 = vrot.lane.b32.xlu2 %v194_v62, %s2112_s3 }
 0x1e7   :  { %v201_v0 = vpop.permute.xlu2 %200 }
 0x1e8   :  { %v2231_v1 = vadd.f32 %v201_v0, %v185_v63 }
 0x1ea   :  { %1927 = vtanh.f32 %v2231_v1  ;;  %v296_v58 = vrot.slane %v2231_v1, 7 }
 0x1ef   :  { %v199_v3 = vpop.permute.xlu2 %198 }
 0x1f0   :  { %v1928_v4 = vpop.eup %1927  ;;  %v2234_v5 = vadd.f32 %v199_v3, %v184_v2 }
 0x1f1   :  { %212 = vrot.lane.b32.xlu0 %v1928_v4, %s2111_s17 }
 0x1f2   :  { %1929 = vtanh.f32 %v2234_v5 }
 0x1f8   :  { %v1930_v6 = vpop.eup %1929 }
 0x1f9   :  { %210 = vrot.lane.b32.xlu1 %v1930_v6, %s2111_s17 }
 0x263   :  { %v213_v9 = vpop.permute.xlu0 %212 }
 0x264   :  { %v2239_v10 = vmul.f32 %v213_v9, %v180_v53  ;;  %v295_v53 = vrot.slane %v2234_v5, 7 }
 0x266   :  { %v220_v12 = vrot.slane %v2239_v10, 7 }
 0x26b   :  { %v211_v11 = vpop.permute.xlu1 %210 }
 0x26c   :  { %v2242_v13 = vmul.f32 %v211_v11, %v165_v60 }
 0x26e   :  { %v222_v16 = vsel %vm221_vm12, %v220_v12, %v2242_v13 }
 0x26f   :  { %223 = vrot.lane.b32.xlu2 %v222_v16, %s2112_s3 }
 0x2c9   :  { %v224_v18 = vpop.permute.xlu2 %223 }
 0x2ca   :  { %1869 = vmatmul.msk.f32.vlgmr.msra.gmra.mxu2 %vm114_vm13, %v224_v18 }
 0x2cb   :  { %933 = vmatpush.msra.mxu2 %v2169_v7 }
 0x2cd   :  { %934 = vmatpush.msra.mxu2 %v2175_v8 }
 0x2cf   :  { %935 = vmatpush.msra.mxu2 %v2185_v14 }
 0x2d1   :  { %936 = vmatpush.msra.mxu2 %v2191_v15 }
 0x34d   :  { %v244_v19 = vpop.f32.mrf.mxu2 }
 0x34e   :  { %v248_v20 = vrot.slane %v244_v19, 7  ;;  %v252_v21 = vadd.f32 %v244_v19, %v2221_v27 }
 0x350   :  { %v251_v22 = vadd.f32 %v248_v20, %v2224_v29  ;;  %1931 = vtanh.f32 %v252_v21  ;;  %v1871_v7 = vmul.f32 -1.442695, %v252_v21 }
 0x352   :  { %1933 = vtanh.f32 %v251_v22  ;;  %v1870_v8 = vmul.f32 -1.442695, %v251_v22 }
 0x353   :  { %1935 = vpow2.f32 %v1871_v7 }
 0x354   :  { %1937 = vpow2.f32 %v1870_v8 }
 0x356   :  { %v1932_v23 = vpop.eup %1931 }
 0x357   :  { %305 = vrot.lane.b32.xlu1 %v1932_v23, %s2111_s17 }
 0x358   :  { %v1934_v24 = vpop.eup %1933 }
 0x359   :  { %303 = vrot.lane.b32.xlu0 %v1934_v24, %s2111_s17  ;;  %v1936_v14 = vpop.eup %1935 }
 0x35a   :  { %v1938_v15 = vpop.eup %1937  ;;  %v260_v25 = vadd.f32 1.0, %v1936_v14 }
 0x35b   :  { %v259_v26 = vadd.f32 1.0, %v1938_v15 }
 0x35c   :  { %1939 = vrcp.f32 %v260_v25  ;;  %v287_v38 = vand.u32 2147483648, %v260_v25  ;;  %vm281_vm15 = vweird.f32 %v260_v25  ;;  %v285_v39 = vand.u32 2147483647, %v260_v25 }
 0x35d   :  { %1941 = vrcp.f32 %v259_v26  ;;  %v272_v42 = vand.u32 2147483648, %v259_v26  ;;  %vm266_vm3 = vweird.f32 %v259_v26  ;;  %v270_v44 = vand.u32 2147483647, %v259_v26 }
 0x35e   :  { %v288_v43 = vor.u32 1.1754944e-38, %v287_v38  ;;  %vm286_vm4 = vcmp.eq.f32.partialorder %v285_v39, 8.507059e+37 }
 0x35f   :  { %v273_v49 = vor.u32 1.1754944e-38, %v272_v42  ;;  %vm271_vm6 = vcmp.eq.f32.partialorder %v270_v44, 8.507059e+37 }
 0x362   :  { %v1940_v28 = vpop.eup %1939 }
 0x363   :  { %v1942_v30 = vpop.eup %1941  ;;  %v277_v31 = vmul.f32 %v1940_v28, %v260_v25  ;;  %vm282_vm14 = vweird.f32 %v1940_v28 }
 0x364   :  { %v262_v32 = vmul.f32 %v1942_v30, %v259_v26  ;;  %vm283_vm1 = vmor %vm281_vm15, %vm282_vm14  ;;  %vm267_vm2 = vweird.f32 %v1942_v30 }
 0x365   :  { %v278_v33 = vsub.f32 1.0, %v277_v31  ;;  %vm268_vm5 = vmor %vm266_vm3, %vm267_vm2  ;;  %vm1028_vm2 = vcmask 1040384  }
 0x366   :  { %v263_v34 = vsub.f32 1.0, %v262_v32 }
 0x367   :  { %v279_v35 = vmul.f32 %v1940_v28, %v278_v33 }
 0x368   :  { %v264_v36 = vmul.f32 %v1942_v30, %v263_v34 }
 0x369   :  { %v280_v37 = vadd.f32 %v1940_v28, %v279_v35 }
 0x36a   :  { %v265_v40 = vadd.f32 %v1942_v30, %v264_v36 }
 0x36b   :  { %v284_v41 = vsel %vm283_vm1, %v1940_v28, %v280_v37 }
 0x36c   :  { %v289_v46 = vsel %vm286_vm4, %v288_v43, %v284_v41  ;;  %v269_v47 = vsel %vm268_vm5, %v1942_v30, %v265_v40 }
 0x36d   :  { %v274_v51 = vsel %vm271_vm6, %v273_v49, %v269_v47  ;;  %v300_v59 = vmul.f32 %v296_v58, %v289_v46 }
 0x36e   :  { %v299_v54 = vmul.f32 %v295_v53, %v274_v51 }
 0x3c9   :  { %v306_v45 = vpop.permute.xlu1 %305 }
 0x3ca   :  { %v310_v48 = vmul.f32 %v306_v45, %v289_v46 }
 0x3cb   :  { %v304_v50 = vpop.permute.xlu0 %303 }
 0x3cc   :  { %315 = vrot.lane.b32.xlu0 %v310_v48, %s2112_s3  ;;  %v309_v52 = vmul.f32 %v304_v50, %v274_v51 }
 0x3ce   :  { %313 = vrot.lane.b32.xlu2 %v309_v52, %s2112_s3 }
 0x428   :  { %v314_v55 = vpop.permute.xlu2 %313 }
 0x429   :  { %v2259_v56 = vadd.f32 %v314_v55, %v299_v54 }
 0x42b   :  { %1943 = vtanh.f32 %v2259_v56  ;;  %v410_v53 = vrot.slane %v2259_v56, 7 }
 0x431   :  { %v1944_v57 = vpop.eup %1943 }
 0x432   :  { %325 = vrot.lane.b32.xlu1 %v1944_v57, %s2111_s17 }
 0x43e   :  { %v316_v60 = vpop.permute.xlu0 %315 }
 0x43f   :  { %v2264_v61 = vadd.f32 %v316_v60, %v300_v59 }
 0x441   :  { %1945 = vtanh.f32 %v2264_v61  ;;  %v411_v48 = vrot.slane %v2264_v61, 7 }
 0x447   :  { %v1946_v62 = vpop.eup %1945 }
 0x448   :  { %327 = vrot.lane.b32.xlu2 %v1946_v62, %s2111_s17 }
 0x4a2   :  { %v328_v63 = vpop.permute.xlu2 %327 }
 0x4a3   :  { %v2270_v3 = vmul.f32 %v328_v63, %v289_v46 }
 0x4a4   :  { %v326_v0 = vpop.permute.xlu1 %325 }
 0x4a5   :  { %v2268_v2 = vmul.f32 %v326_v0, %v274_v51  ;;  %v1030_v56 = vsel %vm1028_vm2, %v2239_v10, %v2270_v3 }
 0x4a7   :  { %v335_v4 = vrot.slane %v2268_v2, 1  ;;  %v1029_v62 = vsel %vm1028_vm2, %v2242_v13, %v2268_v2 }
 0x4a9   :  { %v336_v1 = vsel %vm221_vm12, %v2270_v3, %v335_v4 }
 0x4aa   :  { %337 = vrot.lane.b32.xlu0 %v336_v1, %s2112_s3 }
 0x51c   :  { %v338_v5 = vpop.permute.xlu0 %337 }
 0x51d   :  { %1872 = vmatmul.msk.f32.vlgmr.msra.gmra.mxu3 %vm114_vm13, %v338_v5 }
 0x5a0   :  { %v358_v6 = vpop.f32.mrf.mxu3 }
 0x5a1   :  { %v362_v9 = vrot.slane %v358_v6, 6  ;;  %v363_v11 = vrot.slane %v358_v6, 7 }
 0x5a3   :  { %v366_v12 = vadd.f32 %v362_v9, %v2224_v29  ;;  %v367_v16 = vadd.f32 %v363_v11, %v2221_v27 }
 0x5a5   :  { %1947 = vtanh.f32 %v366_v12  ;;  %v1874_v20 = vmul.f32 -1.442695, %v367_v16  ;;  %v1873_v24 = vmul.f32 -1.442695, %v366_v12 }
 0x5a6   :  { %1949 = vtanh.f32 %v367_v16 }
 0x5a7   :  { %1951 = vpow2.f32 %v1874_v20 }
 0x5ab   :  { %v1948_v18 = vpop.eup %1947 }
 0x5ac   :  { %v1950_v19 = vpop.eup %1949  ;;  %418 = vrot.lane.b32.xlu1 %v1948_v18, %s2111_s17 }
 0x5ad   :  { %420 = vrot.lane.b32.xlu2 %v1950_v19, %s2111_s17  ;;  %v1952_v21 = vpop.eup %1951 }
 0x5ae   :  { %v375_v22 = vadd.f32 1.0, %v1952_v21 }
 0x5b0   :  { %1953 = vrcp.f32 %v375_v22  ;;  %v402_v28 = vand.u32 2147483648, %v375_v22  ;;  %vm396_vm8 = vweird.f32 %v375_v22  ;;  %v400_v30 = vand.u32 2147483647, %v375_v22 }
 0x5b1   :  { %1955 = vpow2.f32 %v1873_v24 }
 0x5b2   :  { %v403_v32 = vor.u32 1.1754944e-38, %v402_v28  ;;  %vm401_vm10 = vcmp.eq.f32.partialorder %v400_v30, 8.507059e+37 }
 0x5b6   :  { %v1954_v23 = vpop.eup %1953 }
 0x5b7   :  { %v392_v7 = vmul.f32 %v1954_v23, %v375_v22  ;;  %v1956_v14 = vpop.eup %1955  ;;  %vm397_vm7 = vweird.f32 %v1954_v23 }
 0x5b8   :  { %v374_v25 = vadd.f32 1.0, %v1956_v14  ;;  %vm398_vm9 = vmor %vm396_vm8, %vm397_vm7 }
 0x5b9   :  { %v393_v8 = vsub.f32 1.0, %v392_v7 }
 0x5ba   :  { %1957 = vrcp.f32 %v374_v25  ;;  %v387_v41 = vand.u32 2147483648, %v374_v25  ;;  %vm381_vm14 = vweird.f32 %v374_v25  ;;  %v385_v42 = vand.u32 2147483647, %v374_v25 }
 0x5bb   :  { %v394_v15 = vmul.f32 %v1954_v23, %v393_v8 }
 0x5bc   :  { %v388_v44 = vor.u32 1.1754944e-38, %v387_v41  ;;  %vm386_vm1 = vcmp.eq.f32.partialorder %v385_v42, 8.507059e+37 }
 0x5bd   :  { %v395_v26 = vadd.f32 %v1954_v23, %v394_v15 }
 0x5bf   :  { %v399_v31 = vsel %vm398_vm9, %v1954_v23, %v395_v26 }
 0x5c0   :  { %v404_v34 = vsel %vm401_vm10, %v403_v32, %v399_v31  ;;  %v1958_v35 = vpop.eup %1957  ;;  %vm1033_vm10 = vcmask 1042432  }
 0x5c1   :  { %v377_v37 = vmul.f32 %v1958_v35, %v374_v25  ;;  %vm382_vm11 = vweird.f32 %v1958_v35  ;;  %v415_v49 = vmul.f32 %v411_v48, %v404_v34 }
 0x5c2   :  { %vm383_vm15 = vmor %vm381_vm14, %vm382_vm11 }
 0x5c3   :  { %v378_v38 = vsub.f32 1.0, %v377_v37 }
 0x5c5   :  { %v379_v39 = vmul.f32 %v1958_v35, %v378_v38 }
 0x5c7   :  { %v380_v40 = vadd.f32 %v1958_v35, %v379_v39 }
 0x5c9   :  { %v384_v43 = vsel %vm383_vm15, %v1958_v35, %v380_v40 }
 0x5ca   :  { %v389_v46 = vsel %vm386_vm1, %v388_v44, %v384_v43 }
 0x5cb   :  { %v414_v54 = vmul.f32 %v410_v53, %v389_v46 }
 0x607   :  { %v421_v33 = vpop.permute.xlu2 %420 }
 0x608   :  { %v425_v36 = vmul.f32 %v421_v33, %v404_v34 }
 0x60a   :  { %430 = vrot.lane.b32.xlu1 %v425_v36, %s2112_s3 }
 0x61e   :  { %v419_v45 = vpop.permute.xlu1 %418 }
 0x61f   :  { %v424_v47 = vmul.f32 %v419_v45, %v389_v46 }
 0x621   :  { %428 = vrot.lane.b32.xlu0 %v424_v47, %s2112_s3 }
 0x67c   :  { %v431_v50 = vpop.permute.xlu1 %430 }
 0x67d   :  { %v2284_v51 = vadd.f32 %v431_v50, %v415_v49 }
 0x67f   :  { %1959 = vtanh.f32 %v2284_v51  ;;  %v527_v47 = vrot.slane %v2284_v51, 7 }
 0x685   :  { %v1960_v52 = vpop.eup %1959 }
 0x686   :  { %442 = vrot.lane.b32.xlu0 %v1960_v52, %s2111_s17 }
 0x693   :  { %v429_v55 = vpop.permute.xlu0 %428 }
 0x694   :  { %v2289_v57 = vadd.f32 %v429_v55, %v414_v54 }
 0x696   :  { %1961 = vtanh.f32 %v2289_v57 }
 0x69c   :  { %v1962_v58 = vpop.eup %1961 }
 0x69d   :  { %440 = vrot.lane.b32.xlu2 %v1962_v58, %s2111_s17 }
 0x6f7   :  { %v441_v59 = vpop.permute.xlu2 %440 }
 0x6f8   :  { %v443_v60 = vpop.permute.xlu0 %442  ;;  %v446_v61 = vmul.f32 %v441_v59, %v389_v46  ;;  %v526_v46 = vrot.slane %v2289_v57, 7 }
 0x6f9   :  { %v447_v63 = vmul.f32 %v443_v60, %v404_v34 }
 0x6fa   :  { %v450_v0 = vrot.slane %v446_v61, 2  ;;  %v2298_v4 = vsel %vm83_vm0, %v1029_v62, %v446_v61 }
 0x6fb   :  { %v451_v1 = vrot.slane %v447_v63, 1  ;;  %v2301_v5 = vsel %vm83_vm0, %v1030_v56, %v447_v63 }
 0x6fd   :  { %v452_v6 = vsel %vm221_vm12, %v451_v1, %v450_v0 }
 0x6fe   :  { %453 = vrot.lane.b32.xlu1 %v452_v6, %s2112_s3 }
 0x770   :  { %v454_v9 = vpop.permute.xlu1 %453 }
 0x771   :  { %1875 = vmatmul.msk.f32.vlgmr.msrb.gmra.mxu1 %vm114_vm13, %v454_v9 }
 0x7ee   :  { %v474_v13 = vpop.f32.mrf.mxu1 }
 0x7ef   :  { %v478_v2 = vrot.slane %v474_v13, 5  ;;  %v479_v11 = vrot.slane %v474_v13, 6 }
 0x7f1   :  { %v482_v10 = vadd.f32 %v478_v2, %v2224_v29  ;;  %v483_v3 = vadd.f32 %v479_v11, %v2221_v27 }
 0x7f3   :  { %1963 = vtanh.f32 %v482_v10  ;;  %v1876_v18 = vmul.f32 -1.442695, %v482_v10  ;;  %v1877_v22 = vmul.f32 -1.442695, %v483_v3 }
 0x7f4   :  { %1965 = vtanh.f32 %v483_v3 }
 0x7f5   :  { %1967 = vpow2.f32 %v1876_v18 }
 0x7f9   :  { %v1964_v12 = vpop.eup %1963 }
 0x7fa   :  { %v1966_v16 = vpop.eup %1965  ;;  %534 = vrot.lane.b32.xlu2 %v1964_v12, %s2111_s17 }
 0x7fb   :  { %536 = vrot.lane.b32.xlu0 %v1966_v16, %s2111_s17  ;;  %v1968_v19 = vpop.eup %1967 }
 0x7fc   :  { %v490_v20 = vadd.f32 1.0, %v1968_v19 }
 0x7fe   :  { %1969 = vrcp.f32 %v490_v20  ;;  %v503_v25 = vand.u32 2147483648, %v490_v20  ;;  %vm497_vm3 = vweird.f32 %v490_v20  ;;  %v501_v26 = vand.u32 2147483647, %v490_v20 }
 0x7ff   :  { %1971 = vpow2.f32 %v1877_v22 }
 0x800   :  { %v504_v30 = vor.u32 1.1754944e-38, %v503_v25  ;;  %vm502_vm5 = vcmp.eq.f32.partialorder %v501_v26, 8.507059e+37 }
 0x804   :  { %v1970_v21 = vpop.eup %1969 }
 0x805   :  { %v493_v23 = vmul.f32 %v1970_v21, %v490_v20  ;;  %v1972_v8 = vpop.eup %1971  ;;  %vm498_vm0 = vweird.f32 %v1970_v21 }
 0x806   :  { %v491_v14 = vadd.f32 1.0, %v1972_v8  ;;  %vm499_vm4 = vmor %vm497_vm3, %vm498_vm0 }
 0x807   :  { %v494_v24 = vsub.f32 1.0, %v493_v23 }
 0x808   :  { %1973 = vrcp.f32 %v491_v14  ;;  %v518_v39 = vand.u32 2147483648, %v491_v14  ;;  %vm512_vm7 = vweird.f32 %v491_v14  ;;  %v516_v40 = vand.u32 2147483647, %v491_v14 }
 0x809   :  { %v495_v7 = vmul.f32 %v1970_v21, %v494_v24 }
 0x80a   :  { %v519_v42 = vor.u32 1.1754944e-38, %v518_v39  ;;  %vm517_vm9 = vcmp.eq.f32.partialorder %v516_v40, 8.507059e+37 }
 0x80b   :  { %v496_v15 = vadd.f32 %v1970_v21, %v495_v7 }
 0x80d   :  { %v500_v28 = vsel %vm499_vm4, %v1970_v21, %v496_v15 }
 0x80e   :  { %v505_v32 = vsel %vm502_vm5, %v504_v30, %v500_v28  ;;  %v1974_v34 = vpop.eup %1973  ;;  %vm1036_vm5 = vcmask 1043456  }
 0x80f   :  { %v508_v35 = vmul.f32 %v1974_v34, %v491_v14  ;;  %vm513_vm6 = vweird.f32 %v1974_v34  ;;  %v530_v48 = vmul.f32 %v526_v46, %v505_v32 }
 0x810   :  { %vm514_vm8 = vmor %vm512_vm7, %vm513_vm6 }
 0x811   :  { %v509_v36 = vsub.f32 1.0, %v508_v35 }
 0x813   :  { %v510_v37 = vmul.f32 %v1974_v34, %v509_v36 }
 0x815   :  { %v511_v38 = vadd.f32 %v1974_v34, %v510_v37 }
 0x817   :  { %v515_v41 = vsel %vm514_vm8, %v1974_v34, %v511_v38 }
 0x818   :  { %v520_v44 = vsel %vm517_vm9, %v519_v42, %v515_v41 }
 0x819   :  { %v531_v49 = vmul.f32 %v527_v47, %v520_v44 }
 0x854   :  { %v535_v31 = vpop.permute.xlu2 %534 }
 0x855   :  { %v540_v33 = vmul.f32 %v535_v31, %v505_v32 }
 0x857   :  { %544 = vrot.lane.b32.xlu1 %v540_v33, %s2112_s3 }
 0x86d   :  { %v537_v43 = vpop.permute.xlu0 %536 }
 0x86e   :  { %v541_v45 = vmul.f32 %v537_v43, %v520_v44 }
 0x870   :  { %546 = vrot.lane.b32.xlu2 %v541_v45, %s2112_s3 }
 0x8c9   :  { %v545_v50 = vpop.permute.xlu1 %544 }
 0x8ca   :  { %v547_v52 = vpop.permute.xlu2 %546  ;;  %v2314_v53 = vadd.f32 %v545_v50, %v530_v48 }
 0x8cb   :  { %v2316_v54 = vadd.f32 %v547_v52, %v531_v49 }
 0x8cc   :  { %1975 = vtanh.f32 %v2314_v53  ;;  %v642_v42 = vrot.slane %v2314_v53, 7 }
 0x8cd   :  { %1977 = vtanh.f32 %v2316_v54  ;;  %v643_v47 = vrot.slane %v2316_v54, 7 }
 0x8d2   :  { %v1976_v55 = vpop.eup %1975 }
 0x8d3   :  { %v1978_v58 = vpop.eup %1977  ;;  %556 = vrot.lane.b32.xlu0 %v1976_v55, %s2111_s17 }
 0x8d4   :  { %558 = vrot.lane.b32.xlu1 %v1978_v58, %s2111_s17 }
 0x945   :  { %v557_v51 = vpop.permute.xlu0 %556 }
 0x946   :  { %v559_v57 = vpop.permute.xlu1 %558  ;;  %v562_v59 = vmul.f32 %v557_v51, %v505_v32 }
 0x947   :  { %v563_v60 = vmul.f32 %v559_v57, %v520_v44 }
 0x948   :  { %v566_v61 = vrot.slane %v562_v59, 3  ;;  %v2323_v62 = vsel %vm1033_vm10, %v2298_v4, %v562_v59 }
 0x949   :  { %v567_v63 = vrot.slane %v563_v60, 2  ;;  %v2326_v56 = vsel %vm1033_vm10, %v2301_v5, %v563_v60 }
 0x94b   :  { %v568_v0 = vsel %vm221_vm12, %v567_v63, %v566_v61 }
 0x94c   :  { %569 = vrot.lane.b32.xlu2 %v568_v0, %s2112_s3 }
 0x9a6   :  { %v570_v1 = vpop.permute.xlu2 %569 }
 0x9a7   :  { %1878 = vmatmul.msk.f32.vlgmr.msrb.gmra.mxu2 %vm114_vm13, %v570_v1 }
 0xa2a   :  { %v590_v6 = vpop.f32.mrf.mxu2 }
 0xa2b   :  { %v594_v9 = vrot.slane %v590_v6, 4  ;;  %v595_v13 = vrot.slane %v590_v6, 5 }
 0xa2d   :  { %v598_v2 = vadd.f32 %v594_v9, %v2224_v29  ;;  %v599_v11 = vadd.f32 %v595_v13, %v2221_v27 }
 0xa2f   :  { %1979 = vtanh.f32 %v598_v2  ;;  %v1879_v5 = vmul.f32 -1.442695, %v598_v2  ;;  %v1880_v3 = vmul.f32 -1.442695, %v599_v11 }
 0xa30   :  { %1981 = vtanh.f32 %v599_v11 }
 0xa31   :  { %1983 = vpow2.f32 %v1879_v5 }
 0xa32   :  { %1985 = vpow2.f32 %v1880_v3 }
 0xa35   :  { %v1980_v4 = vpop.eup %1979 }
 0xa36   :  { %v1982_v10 = vpop.eup %1981  ;;  %650 = vrot.lane.b32.xlu0 %v1980_v4, %s2111_s17 }
 0xa37   :  { %652 = vrot.lane.b32.xlu1 %v1982_v10, %s2111_s17  ;;  %v1984_v12 = vpop.eup %1983 }
 0xa38   :  { %v1986_v16 = vpop.eup %1985  ;;  %v606_v18 = vadd.f32 1.0, %v1984_v12 }
 0xa39   :  { %v607_v19 = vadd.f32 1.0, %v1986_v16 }
 0xa3a   :  { %1987 = vrcp.f32 %v606_v18  ;;  %v619_v26 = vand.u32 2147483648, %v606_v18  ;;  %vm613_vm15 = vweird.f32 %v606_v18  ;;  %v617_v30 = vand.u32 2147483647, %v606_v18 }
 0xa3b   :  { %1989 = vrcp.f32 %v607_v19  ;;  %v634_v28 = vand.u32 2147483648, %v607_v19  ;;  %vm628_vm1 = vweird.f32 %v607_v19  ;;  %v632_v31 = vand.u32 2147483647, %v607_v19 }
 0xa3c   :  { %v620_v34 = vor.u32 1.1754944e-38, %v619_v26  ;;  %vm618_vm3 = vcmp.eq.f32.partialorder %v617_v30, 8.507059e+37 }
 0xa3d   :  { %v635_v35 = vor.u32 1.1754944e-38, %v634_v28  ;;  %vm633_vm4 = vcmp.eq.f32.partialorder %v632_v31, 8.507059e+37 }
 0xa40   :  { %v1988_v20 = vpop.eup %1987 }
 0xa41   :  { %v1990_v21 = vpop.eup %1989  ;;  %v609_v22 = vmul.f32 %v1988_v20, %v606_v18  ;;  %vm614_vm11 = vweird.f32 %v1988_v20 }
 0xa42   :  { %v624_v23 = vmul.f32 %v1990_v21, %v607_v19  ;;  %vm629_vm14 = vweird.f32 %v1990_v21  ;;  %vm615_vm2 = vmor %vm613_vm15, %vm614_vm11 }
 0xa43   :  { %v610_v24 = vsub.f32 1.0, %v609_v22  ;;  %vm630_vm0 = vmor %vm628_vm1, %vm629_vm14  ;;  %vm1039_vm1 = vcmask 1044480  }
 0xa44   :  { %v625_v7 = vsub.f32 1.0, %v624_v23 }
 0xa45   :  { %v611_v8 = vmul.f32 %v1988_v20, %v610_v24 }
 0xa46   :  { %v626_v14 = vmul.f32 %v1990_v21, %v625_v7 }
 0xa47   :  { %v612_v15 = vadd.f32 %v1988_v20, %v611_v8 }
 0xa48   :  { %v627_v25 = vadd.f32 %v1990_v21, %v626_v14 }
 0xa49   :  { %v616_v32 = vsel %vm615_vm2, %v1988_v20, %v612_v15 }
 0xa4a   :  { %v631_v33 = vsel %vm630_vm0, %v1990_v21, %v627_v25  ;;  %v621_v37 = vsel %vm618_vm3, %v620_v34, %v616_v32 }
 0xa4b   :  { %v636_v39 = vsel %vm633_vm4, %v635_v35, %v631_v33  ;;  %v646_v43 = vmul.f32 %v642_v42, %v621_v37 }
 0xa4c   :  { %v647_v48 = vmul.f32 %v643_v47, %v636_v39 }
 0xaa8   :  { %v651_v36 = vpop.permute.xlu0 %650 }
 0xaa9   :  { %v653_v38 = vpop.permute.xlu1 %652  ;;  %v656_v40 = vmul.f32 %v651_v36, %v621_v37 }
 0xaaa   :  { %v657_v41 = vmul.f32 %v653_v38, %v636_v39 }
 0xaab   :  { %660 = vrot.lane.b32.xlu2 %v656_v40, %s2112_s3 }
 0xaac   :  { %662 = vrot.lane.b32.xlu0 %v657_v41, %s2112_s3 }
 0xb05   :  { %v661_v44 = vpop.permute.xlu2 %660 }
 0xb06   :  { %v2338_v45 = vadd.f32 %v661_v44, %v646_v43 }
 0xb08   :  { %1991 = vtanh.f32 %v2338_v45  ;;  %v758_v43 = vrot.slane %v2338_v45, 7 }
 0xb0e   :  { %v1992_v46 = vpop.eup %1991 }
 0xb0f   :  { %672 = vrot.lane.b32.xlu1 %v1992_v46, %s2111_s17 }
 0xb1e   :  { %v663_v49 = vpop.permute.xlu0 %662 }
 0xb1f   :  { %v2343_v50 = vadd.f32 %v663_v49, %v647_v48 }
 0xb21   :  { %1993 = vtanh.f32 %v2343_v50  ;;  %v759_v38 = vrot.slane %v2343_v50, 7 }
 0xb27   :  { %v1994_v52 = vpop.eup %1993 }
 0xb28   :  { %674 = vrot.lane.b32.xlu2 %v1994_v52, %s2111_s17 }
 0xb81   :  { %v673_v53 = vpop.permute.xlu1 %672 }
 0xb82   :  { %v675_v55 = vpop.permute.xlu2 %674  ;;  %v678_v58 = vmul.f32 %v673_v53, %v621_v37 }
 0xb83   :  { %v679_v51 = vmul.f32 %v675_v55, %v636_v39 }
 0xb84   :  { %v682_v57 = vrot.slane %v678_v58, 4  ;;  %v2348_v59 = vsel %vm1036_vm5, %v2323_v62, %v678_v58 }
 0xb85   :  { %v683_v60 = vrot.slane %v679_v51, 3  ;;  %v2351_v54 = vsel %vm1036_vm5, %v2326_v56, %v679_v51 }
 0xb87   :  { %v684_v61 = vsel %vm221_vm12, %v683_v60, %v682_v57 }
 0xb88   :  { %685 = vrot.lane.b32.xlu0 %v684_v61, %s2112_s3 }
 0xbfa   :  { %v686_v63 = vpop.permute.xlu0 %685 }
 0xbfb   :  { %1881 = vmatmul.msk.f32.vlgmr.msrb.gmra.mxu3 %vm114_vm13, %v686_v63 }
 0xc7e   :  { %v706_v0 = vpop.f32.mrf.mxu3 }
 0xc7f   :  { %v710_v1 = vrot.slane %v706_v0, 3  ;;  %v711_v6 = vrot.slane %v706_v0, 4 }
 0xc81   :  { %v714_v9 = vadd.f32 %v710_v1, %v2224_v29  ;;  %v715_v13 = vadd.f32 %v711_v6, %v2221_v27 }
 0xc83   :  { %1995 = vtanh.f32 %v714_v9  ;;  %v1883_v56 = vmul.f32 -1.442695, %v715_v13  ;;  %v1882_v5 = vmul.f32 -1.442695, %v714_v9 }
 0xc84   :  { %1997 = vtanh.f32 %v715_v13 }
 0xc85   :  { %1999 = vpow2.f32 %v1883_v56 }
 0xc89   :  { %v1996_v62 = vpop.eup %1995 }
 0xc8a   :  { %v1998_v2 = vpop.eup %1997  ;;  %766 = vrot.lane.b32.xlu1 %v1996_v62, %s2111_s17 }
 0xc8b   :  { %768 = vrot.lane.b32.xlu2 %v1998_v2, %s2111_s17  ;;  %v2000_v11 = vpop.eup %1999 }
 0xc8c   :  { %v723_v4 = vadd.f32 1.0, %v2000_v11 }
 0xc8e   :  { %2001 = vrcp.f32 %v723_v4  ;;  %v750_v21 = vand.u32 2147483648, %v723_v4  ;;  %vm744_vm7 = vweird.f32 %v723_v4  ;;  %v748_v22 = vand.u32 2147483647, %v723_v4 }
 0xc8f   :  { %2003 = vpow2.f32 %v1882_v5 }
 0xc90   :  { %v751_v24 = vor.u32 1.1754944e-38, %v750_v21  ;;  %vm749_vm9 = vcmp.eq.f32.partialorder %v748_v22, 8.507059e+37 }
 0xc94   :  { %v2002_v10 = vpop.eup %2001 }
 0xc95   :  { %v740_v3 = vmul.f32 %v2002_v10, %v723_v4  ;;  %v2004_v16 = vpop.eup %2003  ;;  %vm745_vm6 = vweird.f32 %v2002_v10 }
 0xc96   :  { %v722_v19 = vadd.f32 1.0, %v2004_v16  ;;  %vm746_vm8 = vmor %vm744_vm7, %vm745_vm6 }
 0xc97   :  { %v741_v12 = vsub.f32 1.0, %v740_v3 }
 0xc98   :  { %2005 = vrcp.f32 %v722_v19  ;;  %v735_v31 = vand.u32 2147483648, %v722_v19  ;;  %vm729_vm11 = vweird.f32 %v722_v19  ;;  %v733_v32 = vand.u32 2147483647, %v722_v19 }
 0xc99   :  { %v742_v18 = vmul.f32 %v2002_v10, %v741_v12 }
 0xc9a   :  { %v736_v34 = vor.u32 1.1754944e-38, %v735_v31  ;;  %vm734_vm15 = vcmp.eq.f32.partialorder %v733_v32, 8.507059e+37 }
 0xc9b   :  { %v743_v20 = vadd.f32 %v2002_v10, %v742_v18 }
 0xc9d   :  { %v747_v23 = vsel %vm746_vm8, %v2002_v10, %v743_v20 }
 0xc9e   :  { %v752_v8 = vsel %vm749_vm9, %v751_v24, %v747_v23  ;;  %v2006_v14 = vpop.eup %2005  ;;  %vm1042_vm9 = vcmask 1045504  }
 0xc9f   :  { %v725_v25 = vmul.f32 %v2006_v14, %v722_v19  ;;  %vm730_vm10 = vweird.f32 %v2006_v14  ;;  %v763_v39 = vmul.f32 %v759_v38, %v752_v8 }
 0xca0   :  { %vm731_vm14 = vmor %vm729_vm11, %vm730_vm10 }
 0xca1   :  { %v726_v26 = vsub.f32 1.0, %v725_v25 }
 0xca3   :  { %v727_v28 = vmul.f32 %v2006_v14, %v726_v26 }
 0xca5   :  { %v728_v30 = vadd.f32 %v2006_v14, %v727_v28 }
 0xca7   :  { %v732_v33 = vsel %vm731_vm14, %v2006_v14, %v728_v30 }
 0xca8   :  { %v737_v36 = vsel %vm734_vm15, %v736_v34, %v732_v33 }
 0xca9   :  { %v762_v44 = vmul.f32 %v758_v43, %v737_v36 }
 0xce5   :  { %v769_v7 = vpop.permute.xlu2 %768 }
 0xce6   :  { %v773_v15 = vmul.f32 %v769_v7, %v752_v8 }
 0xce8   :  { %778 = vrot.lane.b32.xlu1 %v773_v15, %s2112_s3 }
 0xcfc   :  { %v767_v35 = vpop.permute.xlu1 %766 }
 0xcfd   :  { %v772_v37 = vmul.f32 %v767_v35, %v737_v36 }
 0xcff   :  { %776 = vrot.lane.b32.xlu0 %v772_v37, %s2112_s3 }
 0xd5a   :  { %v779_v40 = vpop.permute.xlu1 %778 }
 0xd5b   :  { %v2363_v41 = vadd.f32 %v779_v40, %v763_v39 }
 0xd5d   :  { %2007 = vtanh.f32 %v2363_v41  ;;  %v875_v35 = vrot.slane %v2363_v41, 7 }
 0xd63   :  { %v2008_v42 = vpop.eup %2007 }
 0xd64   :  { %790 = vrot.lane.b32.xlu0 %v2008_v42, %s2111_s17 }
 0xd71   :  { %v777_v46 = vpop.permute.xlu0 %776 }
 0xd72   :  { %v2368_v47 = vadd.f32 %v777_v46, %v762_v44 }
 0xd74   :  { %2009 = vtanh.f32 %v2368_v47  ;;  %v874_v34 = vrot.slane %v2368_v47, 7 }
 0xd7a   :  { %v2010_v48 = vpop.eup %2009 }
 0xd7b   :  { %788 = vrot.lane.b32.xlu2 %v2010_v48, %s2111_s17 }
 0xdd5   :  { %v789_v49 = vpop.permute.xlu2 %788 }
 0xdd6   :  { %v791_v50 = vpop.permute.xlu0 %790  ;;  %v794_v52 = vmul.f32 %v789_v49, %v737_v36 }
 0xdd7   :  { %v795_v53 = vmul.f32 %v791_v50, %v752_v8 }
 0xdd8   :  { %v798_v55 = vrot.slane %v794_v52, 5  ;;  %v2373_v58 = vsel %vm1039_vm1, %v2348_v59, %v794_v52 }
 0xdd9   :  { %v799_v51 = vrot.slane %v795_v53, 4  ;;  %v2376_v45 = vsel %vm1039_vm1, %v2351_v54, %v795_v53 }
 0xddb   :  { %v800_v57 = vsel %vm221_vm12, %v799_v51, %v798_v55 }
 0xddc   :  { %801 = vrot.lane.b32.xlu1 %v800_v57, %s2112_s3 }
 0xe4e   :  { %v802_v60 = vpop.permute.xlu1 %801 }
 0xe4f   :  { %1884 = vmatmul.msk.f32.vlgmr.msra.gmra.mxu1 %vm114_vm13, %v802_v60 }
 0xecc   :  { %v822_v61 = vpop.f32.mrf.mxu1 }
 0xecd   :  { %v826_v63 = vrot.slane %v822_v61, 2  ;;  %v827_v0 = vrot.slane %v822_v61, 3 }
 0xecf   :  { %v830_v1 = vadd.f32 %v826_v63, %v2224_v29  ;;  %v831_v6 = vadd.f32 %v827_v0, %v2221_v27 }
 0xed1   :  { %2011 = vtanh.f32 %v830_v1  ;;  %v1885_v54 = vmul.f32 -1.442695, %v830_v1  ;;  %v1886_v56 = vmul.f32 -1.442695, %v831_v6 }
 0xed2   :  { %2013 = vtanh.f32 %v831_v6 }
 0xed3   :  { %2015 = vpow2.f32 %v1885_v54 }
 0xed7   :  { %v2012_v59 = vpop.eup %2011 }
 0xed8   :  { %v2014_v9 = vpop.eup %2013  ;;  %882 = vrot.lane.b32.xlu2 %v2012_v59, %s2111_s17 }
 0xed9   :  { %884 = vrot.lane.b32.xlu0 %v2014_v9, %s2111_s17  ;;  %v2016_v13 = vpop.eup %2015 }
 0xeda   :  { %v838_v62 = vadd.f32 1.0, %v2016_v13 }
 0xedc   :  { %2017 = vrcp.f32 %v838_v62  ;;  %v851_v16 = vand.u32 2147483648, %v838_v62  ;;  %vm845_vm0 = vweird.f32 %v838_v62  ;;  %v849_v18 = vand.u32 2147483647, %v838_v62 }
 0xedd   :  { %2019 = vpow2.f32 %v1886_v56 }
 0xede   :  { %v852_v20 = vor.u32 1.1754944e-38, %v851_v16  ;;  %vm850_vm4 = vcmp.eq.f32.partialorder %v849_v18, 8.507059e+37 }
 0xee2   :  { %v2018_v2 = vpop.eup %2017 }
 0xee3   :  { %v841_v11 = vmul.f32 %v2018_v2, %v838_v62  ;;  %v2020_v5 = vpop.eup %2019  ;;  %vm846_vm2 = vweird.f32 %v2018_v2 }
 0xee4   :  { %v839_v3 = vadd.f32 1.0, %v2020_v5  ;;  %vm847_vm3 = vmor %vm845_vm0, %vm846_vm2 }
 0xee5   :  { %v842_v4 = vsub.f32 1.0, %v841_v11 }
 0xee6   :  { %2021 = vrcp.f32 %v839_v3  ;;  %v866_v25 = vand.u32 2147483648, %v839_v3  ;;  %vm860_vm6 = vweird.f32 %v839_v3  ;;  %v864_v26 = vand.u32 2147483647, %v839_v3 }
 0xee7   :  { %v843_v10 = vmul.f32 %v2018_v2, %v842_v4 }
 0xee8   :  { %v867_v30 = vor.u32 1.1754944e-38, %v866_v25  ;;  %vm865_vm8 = vcmp.eq.f32.partialorder %v864_v26, 8.507059e+37 }
 0xee9   :  { %v844_v12 = vadd.f32 %v2018_v2, %v843_v10 }
 0xeeb   :  { %v848_v19 = vsel %vm847_vm3, %v2018_v2, %v844_v12 }
 0xeec   :  { %v853_v22 = vsel %vm850_vm4, %v852_v20, %v848_v19  ;;  %v2022_v24 = vpop.eup %2021  ;;  %vm1045_vm4 = vcmask 1046528  }
 0xeed   :  { %v856_v7 = vmul.f32 %v2022_v24, %v839_v3  ;;  %vm861_vm5 = vweird.f32 %v2022_v24  ;;  %v878_v36 = vmul.f32 %v874_v34, %v853_v22 }
 0xeee   :  { %vm862_vm7 = vmor %vm860_vm6, %vm861_vm5  ;;  %vm1172_vm5 = vcmask 64512   ;;  %vm1089_vm6 = vcmask 39936  }
 0xeef   :  { %v857_v8 = vsub.f32 1.0, %v856_v7 }
 0xef1   :  { %v858_v14 = vmul.f32 %v2022_v24, %v857_v8 }
 0xef3   :  { %v859_v15 = vadd.f32 %v2022_v24, %v858_v14 }
 0xef5   :  { %v863_v28 = vsel %vm862_vm7, %v2022_v24, %v859_v15 }
 0xef6   :  { %v868_v32 = vsel %vm865_vm8, %v867_v30, %v863_v28 }
 0xef7   :  { %v879_v37 = vmul.f32 %v875_v35, %v868_v32 }
 0xf32   :  { %v883_v21 = vpop.permute.xlu2 %882 }
 0xf33   :  { %v888_v23 = vmul.f32 %v883_v21, %v853_v22 }
 0xf35   :  { %892 = vrot.lane.b32.xlu1 %v888_v23, %s2112_s3 }
 0xf4b   :  { %v885_v31 = vpop.permute.xlu0 %884 }
 0xf4c   :  { %v889_v33 = vmul.f32 %v885_v31, %v868_v32 }
 0xf4e   :  { %894 = vrot.lane.b32.xlu2 %v889_v33, %s2112_s3 }
 0xfa7   :  { %v893_v38 = vpop.permute.xlu1 %892 }
 0xfa8   :  { %v895_v39 = vpop.permute.xlu2 %894  ;;  %v2389_v40 = vadd.f32 %v893_v38, %v878_v36  ;;  %v1051_v38 = vld [vmem:[%s2779_s4 + $0x18] sm:$0xff] }
 0xfa9   :  { %v2391_v42 = vadd.f32 %v895_v39, %v879_v37  ;;  %v1050_v39 = vld [vmem:[%s2779_s4 + $0x10] sm:$0xff]  ;;  %1078 = vmatpush.msra.mxu3 %v1051_v38 }
 0xfaa   :  { %2023 = vtanh.f32 %v2389_v40  ;;  %v990_v26 = vrot.slane %v2389_v40, 7  ;;  %v1049_v40 = vld [vmem:[%s2779_s4 + $0x8] sm:$0xff] }
 0xfab   :  { %2025 = vtanh.f32 %v2391_v42  ;;  %v991_v33 = vrot.slane %v2391_v42, 7  ;;  %1079 = vmatpush.msra.mxu3 %v1050_v39  ;;  %v1048_v42 = vld [vmem:[%s2779_s4] sm:$0xff] }
 0xfad   :  { %1080 = vmatpush.msra.mxu3 %v1049_v40 }
 0xfaf   :  { %1081 = vmatpush.msra.mxu3 %v1048_v42 }
 0xfb0   :  { %v2024_v43 = vpop.eup %2023 }
 0xfb1   :  { %v2026_v44 = vpop.eup %2025  ;;  %904 = vrot.lane.b32.xlu0 %v2024_v43, %s2111_s17 }
 0xfb2   :  { %906 = vrot.lane.b32.xlu1 %v2026_v44, %s2111_s17 }
0x1023   :  { %v905_v46 = vpop.permute.xlu0 %904 }
0x1024   :  { %v907_v41 = vpop.permute.xlu1 %906  ;;  %v910_v47 = vmul.f32 %v905_v46, %v853_v22 }
0x1025   :  { %v911_v48 = vmul.f32 %v907_v41, %v868_v32 }
0x1026   :  { %v914_v49 = vrot.slane %v910_v47, 6  ;;  %v2398_v50 = vsel %vm1042_vm9, %v2373_v58, %v910_v47 }
0x1027   :  { %v915_v52 = vrot.slane %v911_v48, 5  ;;  %v2401_v53 = vsel %vm1042_vm9, %v2376_v45, %v911_v48 }
0x1029   :  { %v916_v55 = vsel %vm221_vm12, %v915_v52, %v914_v49 }
0x102a   :  { %917 = vrot.lane.b32.xlu2 %v916_v55, %s2112_s3 }
0x1084   :  { %v918_v51 = vpop.permute.xlu2 %917 }
0x1085   :  { %1887 = vmatmul.msk.f32.vlgmr.msra.gmra.mxu2 %vm114_vm13, %v918_v51 }
0x1108   :  { %v938_v57 = vpop.f32.mrf.mxu2 }
0x1109   :  { %v942_v60 = vrot.slane %v938_v57, 1  ;;  %v943_v61 = vrot.slane %v938_v57, 2 }
0x110b   :  { %v946_v63 = vadd.f32 %v942_v60, %v2224_v29  ;;  %v947_v0 = vadd.f32 %v943_v61, %v2221_v27 }
0x110d   :  { %2027 = vtanh.f32 %v946_v63  ;;  %v1888_v45 = vmul.f32 -1.442695, %v946_v63  ;;  %v1889_v6 = vmul.f32 -1.442695, %v947_v0 }
0x110e   :  { %2029 = vtanh.f32 %v947_v0 }
0x110f   :  { %2031 = vpow2.f32 %v1888_v45 }
0x1110   :  { %2033 = vpow2.f32 %v1889_v6 }
0x1113   :  { %v2028_v58 = vpop.eup %2027 }
0x1114   :  { %v2030_v1 = vpop.eup %2029  ;;  %998 = vrot.lane.b32.xlu0 %v2028_v58, %s2111_s17 }
0x1115   :  { %1000 = vrot.lane.b32.xlu1 %v2030_v1, %s2111_s17  ;;  %v2032_v59 = vpop.eup %2031 }
0x1116   :  { %v2034_v9 = vpop.eup %2033  ;;  %v954_v54 = vadd.f32 1.0, %v2032_v59 }
0x1117   :  { %v955_v13 = vadd.f32 1.0, %v2034_v9 }
0x1118   :  { %2035 = vrcp.f32 %v954_v54  ;;  %v967_v12 = vand.u32 2147483648, %v954_v54  ;;  %vm961_vm14 = vweird.f32 %v954_v54  ;;  %v965_v18 = vand.u32 2147483647, %v954_v54 }
0x1119   :  { %2037 = vrcp.f32 %v955_v13  ;;  %v982_v16 = vand.u32 2147483648, %v955_v13  ;;  %vm976_vm15 = vweird.f32 %v955_v13  ;;  %v980_v19 = vand.u32 2147483647, %v955_v13 }
0x111a   :  { %v968_v22 = vor.u32 1.1754944e-38, %v967_v12  ;;  %vm966_vm0 = vcmp.eq.f32.partialorder %v965_v18, 8.507059e+37 }
0x111b   :  { %v983_v23 = vor.u32 1.1754944e-38, %v982_v16  ;;  %vm981_vm3 = vcmp.eq.f32.partialorder %v980_v19, 8.507059e+37 }
0x111e   :  { %v2036_v29 = vpop.eup %2035 }
0x111f   :  { %v2038_v27 = vpop.eup %2037  ;;  %v957_v62 = vmul.f32 %v2036_v29, %v954_v54  ;;  %vm962_vm10 = vweird.f32 %v2036_v29 }
0x1120   :  { %v972_v2 = vmul.f32 %v2038_v27, %v955_v13  ;;  %vm977_vm11 = vweird.f32 %v2038_v27  ;;  %vm963_vm1 = vmor %vm961_vm14, %vm962_vm10  ;;  %vm2114_vm14 = vmmov 1  }
0x1121   :  { %v958_v56 = vsub.f32 1.0, %v957_v62  ;;  %vm978_vm2 = vmor %vm976_vm15, %vm977_vm11 }
0x1122   :  { %v973_v11 = vsub.f32 1.0, %v972_v2 }
0x1123   :  { %v959_v4 = vmul.f32 %v2036_v29, %v958_v56 }
0x1124   :  { %v974_v10 = vmul.f32 %v2038_v27, %v973_v11 }
0x1125   :  { %v960_v5 = vadd.f32 %v2036_v29, %v959_v4 }
0x1126   :  { %v975_v3 = vadd.f32 %v2038_v27, %v974_v10 }
0x1127   :  { %v964_v20 = vsel %vm963_vm1, %v2036_v29, %v960_v5 }
0x1128   :  { %v979_v21 = vsel %vm978_vm2, %v2038_v27, %v975_v3  ;;  %v969_v7 = vsel %vm966_vm0, %v968_v22, %v964_v20  ;;  %vm1418_vm0 = vcmask 1042434  }
0x1129   :  { %v984_v14 = vsel %vm981_vm3, %v983_v23, %v979_v21  ;;  %v994_v28 = vmul.f32 %v990_v26, %v969_v7  ;;  %vm1420_vm3 = vcmask 1043459  }
0x112a   :  { %v995_v34 = vmul.f32 %v991_v33, %v984_v14 }
0x1186   :  { %v999_v24 = vpop.permute.xlu0 %998 }
0x1187   :  { %v1001_v8 = vpop.permute.xlu1 %1000  ;;  %v1004_v15 = vmul.f32 %v999_v24, %v969_v7 }
0x1188   :  { %v1005_v25 = vmul.f32 %v1001_v8, %v984_v14 }
0x1189   :  { %1008 = vrot.lane.b32.xlu2 %v1004_v15, %s2112_s3 }
0x118a   :  { %1010 = vrot.lane.b32.xlu0 %v1005_v25, %s2112_s3 }
0x11e3   :  { %v1009_v30 = vpop.permute.xlu2 %1008 }
0x11e4   :  { %v1014_v31 = vadd.f32 %v1009_v30, %v994_v28 }
0x11e6   :  { %2039 = vtanh.f32 %v1014_v31 }
0x11ec   :  { %v2040_v32 = vpop.eup %2039 }
0x11ed   :  { %1020 = vrot.lane.b32.xlu1 %v2040_v32, %s2111_s17 }
0x11fc   :  { %v1011_v35 = vpop.permute.xlu0 %1010 }
0x11fd   :  { %v1015_v36 = vadd.f32 %v1011_v35, %v995_v34 }
0x11ff   :  { %2041 = vtanh.f32 %v1015_v36 }
0x1205   :  { %v2042_v37 = vpop.eup %2041 }
0x1206   :  { %1022 = vrot.lane.b32.xlu2 %v2042_v37, %s2111_s17 }
0x125f   :  { %v1021_v43 = vpop.permute.xlu1 %1020 }
0x1260   :  { %v1023_v44 = vpop.permute.xlu2 %1022  ;;  %v1026_v46 = vmul.f32 %v1021_v43, %v969_v7 }
0x1261   :  { %v1027_v41 = vmul.f32 %v1023_v44, %v984_v14 }
0x1262   :  { %v1046_v47 = vsel %vm1045_vm4, %v2398_v50, %v1026_v46 }
0x1263   :  { %v1047_v48 = vsel %vm1045_vm4, %v2401_v53, %v1027_v41  ;;  %1058 = vrot.lane.b32.xlu0 %v1046_v47, %s2112_s3  ;;  %v1914_v53 = vld [vmem:[%s2780_s5] ss:$0 sm:$0xff]  ;;  %v2113_v41 = vmov 0   ;;  %vm1422_vm4 = vcmask 1044484  }
0x1264   :  { %1060 = vrot.lane.b32.xlu1 %v1047_v48, %s2112_s3 }
0x12d5   :  { %v2432_v49 = vpop.permute.xlu0 %1058 }
0x12d6   :  { %v2434_v52 = vpop.permute.xlu1 %1060  ;;  %1890 = vmatmul.msk.f32.vlgmr.msra.gmra.mxu3 %vm114_vm13, %v2432_v49  ;;  %1892 = vmatpush.xpose.msk.msrb.mxu0 %vm114_vm13, %v2432_v49 }
0x12d7   :  { %1894 = vmatpush.xpose.msk.msrb.mxu1 %vm114_vm13, %v2434_v52  ;;  %1762 = vmatpush.msrb.mxu2 %v2432_v49 }
0x12d9   :  { %1893 = vmatmul.msk.f32.vlgmr.msrb.gmra.mxu0 %vm114_vm13, %v2432_v49 }
0x12da   :  { %1832 = vmatpush.msra.mxu0 %v2434_v52  ;;  %1895 = vmatmul.msk.f32.vlgmr.msrb.gmra.mxu1 %vm114_vm13, %v2434_v52 }
0x12de   :  { %1891 = vmatmul.msk.f32.gmra.mxu3 %vm114_vm13, %v2434_v52 }
0x1356   :  { %v1149_v50 = vpop.f32.mrf.mxu0 }
0x1357   :  { %v1169_v55 = vpop.f32.mrf.mxu1  ;;  %v1173_v51 = vsel %vm1172_vm5, %v1149_v50, -inf }
0x1358   :  { %1174 = vmax.xlane.f32.xlu1 %v1173_v51  ;;  %v1176_v57 = vsel %vm1172_vm5, %v1169_v55, -inf }
0x1359   :  { %1177 = vmax.xlane.f32.xlu2 %v1176_v57  ;;  %v1083_v60 = vpop.f32.mrf.mxu3 }
0x135a   :  { %v1084_v61 = vadd.f32 %v1914_v53, %v1083_v60 }
0x135c   :  { %1090 = vst.msk [vmem:[%s2782_s7] sm:$0xff] %vm1089_vm6, %v1084_v61  ;;  %v1092_v63 = vsel %vm1089_vm6, %v1084_v61, -inf }
0x1361   :  { %1093 = vmax.xlane.f32.xlu2 %v1092_v63  ;;  %v1086_v0 = vpop.f32.mrf.mxu3 }
0x1362   :  { %v1087_v58 = vadd.f32 %v1914_v53, %v1086_v0 }
0x1364   :  { %1091 = vst.msk [vmem:[%s2782_s7 + $0x8] sm:$0xff] %vm1089_vm6, %v1087_v58  ;;  %v1095_v1 = vsel %vm1089_vm6, %v1087_v58, -inf  ;;  %s2115_s7 = smov [#allocation5]  }
0x1365   :  { %1096 = vmax.xlane.f32.xlu0 %v1095_v1  ;;  %s1843_s1 = sshll.u32 %s2115_s7, 4  ;;  %s1844_s1 = int_to_ptr.vmem [resolvable:$true] %s1843_s1 }
0x13cb   :  { %v1175_v45 = vpop.xlane.xlu1 %1174 }
0x13cc   :  { %v1178_v6 = vpop.xlane.xlu2 %1177  ;;  %v1179_v59 = vsub.f32 %v1149_v50, %v1175_v45 }
0x13cd   :  { %v1180_v29 = vsub.f32 %v1169_v55, %v1178_v6 }
0x13ce   :  { %v1181_v9 = vmul.f32 1.442695, %v1179_v59 }
0x13cf   :  { %v1183_v4 = vmul.f32 1.442695, %v1180_v29 }
0x13d0   :  { %2043 = vpow2.f32 %v1181_v9 }
0x13d1   :  { %2045 = vpow2.f32 %v1183_v4 }
0x13d4   :  { %v1094_v54 = vpop.xlane.xlu2 %1093 }
0x13d5   :  { %vm1098_vm7 = vcmp.ge.f32.partialorder %v1084_v61, %v1094_v54 }
0x13d6   :  { %v2044_v13 = vpop.eup %2043  ;;  %v1100_v27 = vsel %vm1098_vm7, %v2214_v17, 5  ;;  %vm1426_vm7 = vcmask 1046534  }
0x13d7   :  { %v1102_v62 = vsel %vm1089_vm6, %v1100_v27, 2147483647  ;;  %v1207_v2 = vperm.slane %v2044_v13, 2  ;;  %v1193_v56 = vperm.slane %v2044_v13, 0  ;;  %v1235_v5 = vperm.slane %v2044_v13, 6  ;;  %v2046_v12 = vpop.eup %2045 }
0x13d8   :  { %v1104_v11 = vshra.s32 %v1102_v62, 16  ;;  %v1214_v3 = vperm.slane %v2044_v13, 3  ;;  %v1256_v16 = vperm.slane %v2046_v12, 1  ;;  %v1228_v18 = vperm.slane %v2044_v13, 5  ;;  %v1097_v15 = vpop.xlane.xlu0 %1096 }
0x13d9   :  { %1212 = vperm.xlu2 %1909, %v1207_v2   ;;  %1198 = vperm.xlu0 %1907, %v1193_v56   ;;  %v1277_v19 = vperm.slane %v2046_v12, 4  ;;  %v1249_v20 = vperm.slane %v2046_v12, 0  ;;  %v1200_v21 = vperm.slane %v2044_v13, 1  ;;  %v1298_v22 = vperm.slane %v2046_v12, 7 }
0x13da   :  { %v1106_v10 = vcvt.s32.f32 %v1104_v11  ;;  %v1270_v23 = vperm.slane %v2046_v12, 3  ;;  %v1221_v24 = vperm.slane %v2044_v13, 4  ;;  %v1291_v7 = vperm.slane %v2046_v12, 6 }
0x13db   :  { %v1242_v8 = vperm.slane %v2044_v13, 7  ;;  %v1263_v14 = vperm.slane %v2046_v12, 2  ;;  %vm1099_vm8 = vcmp.ge.f32.partialorder %v1087_v58, %v1097_v15  ;;  %v1284_v25 = vperm.slane %v2046_v12, 5 }
0x13dc   :  { %1107 = vmin.xlane.f32.xlu1 %v1106_v10  ;;  %v1101_v26 = vsel %vm1099_vm8, %v2214_v17, 5  ;;  %v1103_v32 = vand.u32 65535, %v1102_v62  ;;  %vm1428_vm8 = vcmask 1047559  }
0x13dd   :  { %v1117_v28 = vsel %vm1089_vm6, %v1101_v26, 2147483647  ;;  %vm1424_vm6 = vcmask 1045509  }
0x13de   :  { %v1119_v30 = vshra.s32 %v1117_v28, 16  ;;  %v1105_v34 = vcvt.s32.f32 %v1103_v32  ;;  %v1118_v42 = vand.u32 65535, %v1117_v28 }
0x13e0   :  { %v1121_v31 = vcvt.s32.f32 %v1119_v30  ;;  %v1120_v44 = vcvt.s32.f32 %v1118_v42 }
0x13e1   :  { %1240 = vperm.xlu2 %1909, %v1235_v5   ;;  %1219 = vperm.xlu0 %1907, %v1214_v3  }
0x13e9   :  { %1261 = vperm.xlu2 %1909, %v1256_v16   ;;  %1233 = vperm.xlu0 %1907, %v1228_v18  }
0x13f1   :  { %1282 = vperm.xlu2 %1909, %v1277_v19   ;;  %1254 = vperm.xlu0 %1907, %v1249_v20  }
0x13f5   :  { %1205 = vperm.xlu1 %1908, %v1200_v21  }
0x13f9   :  { %1303 = vperm.xlu2 %1909, %v1298_v22   ;;  %1275 = vperm.xlu0 %1907, %v1270_v23  }
0x13fd   :  { %1226 = vperm.xlu1 %1908, %v1221_v24  }
0x1401   :  { %1296 = vperm.xlu0 %1907, %v1291_v7   ;;  %1912 = vset.pattern.permute.xlu2 %v2113_v41 }
0x1405   :  { %1247 = vperm.xlu1 %1908, %v1242_v8  }
0x1409   :  { %1911 = vset.pattern.permute.xlu0 %v2113_v41 }
0x140d   :  { %1268 = vperm.xlu1 %1908, %v1263_v14  }
0x1415   :  { %1289 = vperm.xlu1 %1908, %v1284_v25  }
0x141d   :  { %1910 = vset.pattern.permute.xlu1 %v2113_v41 }
0x1422   :  { %1122 = vmin.xlane.f32.xlu2 %v1121_v31 }
0x1433   :  { %v1213_v36 = vpop.permute.xlu2 %1212 }
0x143b   :  { %v1241_v37 = vpop.permute.xlu2 %1240 }
0x1443   :  { %v2469_v38 = vpop.permute.xlu2 %1261 }
0x144b   :  { %v2471_v39 = vpop.permute.xlu2 %1282  ;;  %v1199_v50 = vpop.permute.xlu0 %1198 }
0x144f   :  { %v1108_v33 = vpop.xlane.xlu1 %1107 }
0x1450   :  { %vm1109_vm9 = vcmp.eq.f32.partialorder %v1106_v10, %v1108_v33  ;;  %v1114_v47 = vcvt.f32.s32 %v1108_v33 }
0x1451   :  { %v1110_v35 = vsel %vm1109_vm9, %v1105_v34, inf }
0x1452   :  { %1111 = vmin.xlane.f32.xlu2 %v1110_v35  ;;  %v1115_v53 = vshll.u32 %v1114_v47, 16 }
0x1453   :  { %v2473_v40 = vpop.permute.xlu2 %1303  ;;  %v1220_v0 = vpop.permute.xlu0 %1219 }
0x145b   :  { %v1234_v9 = vpop.permute.xlu0 %1233 }
0x1463   :  { %v1255_v5 = vpop.permute.xlu0 %1254 }
0x1467   :  { %v1206_v55 = vpop.permute.xlu1 %1205 }
0x146b   :  { %v1276_v12 = vpop.permute.xlu0 %1275 }
0x146f   :  { %v1227_v58 = vpop.permute.xlu1 %1226 }
0x1473   :  { %v1297_v16 = vpop.permute.xlu0 %1296 }
0x1477   :  { %v1248_v54 = vpop.permute.xlu1 %1247 }
0x147f   :  { %v1269_v8 = vpop.permute.xlu1 %1268 }
0x1487   :  { %v1290_v28 = vpop.permute.xlu1 %1289 }
0x1495   :  { %v1123_v43 = vpop.xlane.xlu2 %1122 }
0x1496   :  { %vm1124_vm10 = vcmp.eq.f32.partialorder %v1121_v31, %v1123_v43  ;;  %v1129_v18 = vcvt.f32.s32 %v1123_v43 }
0x1497   :  { %v1125_v46 = vsel %vm1124_vm10, %v1120_v44, inf }
0x1498   :  { %1126 = vmin.xlane.f32.xlu0 %v1125_v46  ;;  %v1130_v20 = vshll.u32 %v1129_v18, 16 }
0x14c5   :  { %v1112_v48 = vpop.xlane.xlu2 %1111 }
0x14c6   :  { %v1113_v51 = vcvt.f32.s32 %v1112_v48 }
0x14c8   :  { %v1116_v57 = vadd.s32 %v1115_v53, %v1113_v51 }
0x14ca   :  { %vm1185_vm11 = vcmp.ne.s32.totalorder %v1116_v57, 0 }
0x14cb   :  { %v2476_v60 = vsel %vm1185_vm11, %v1213_v36, 0.0  ;;  %v2479_v61 = vsel %vm1185_vm11, %v1199_v50, 0.0  ;;  %v2482_v63 = vsel %vm1185_vm11, %v1206_v55, 0.0  ;;  %v2488_v1 = vsel %vm1185_vm11, %v1220_v0, 0.0  ;;  %vm2501_vm15 = vmxor %vm1185_vm11, %vm2114_vm14 }
0x14cc   :  { %1360 = vperm.xlu2 %1912, %v2476_v60   ;;  %1354 = vperm.xlu1 %1910, %v2479_v61   ;;  %v2491_v45 = vsel %vm1185_vm11, %v1227_v58, 0.0  ;;  %v2495_v6 = vsel %vm1185_vm11, %v1241_v37, 0.0  ;;  %v2506_v13 = vsel %vm1185_vm11, %v1234_v9, 0.0  ;;  %v2509_v29 = vsel %vm1185_vm11, %v1248_v54, 0.0 }
0x14cd   :  { %1357 = vperm.xlu0 %1911, %v2482_v63   ;;  %v2514_v27 = vsel %vm2501_vm15, %v1199_v50, 0.0  ;;  %v2520_v62 = vsel %vm2501_vm15, %v1213_v36, 0.0  ;;  %v2524_v2 = vsel %vm2501_vm15, %v1206_v55, 0.0  ;;  %v2529_v56 = vsel %vm2501_vm15, %v1220_v0, 0.0 }
0x14ce   :  { %v2535_v11 = vsel %vm2501_vm15, %v1234_v9, 0.0  ;;  %v2539_v4 = vsel %vm2501_vm15, %v1227_v58, 0.0  ;;  %v2544_v10 = vsel %vm2501_vm15, %v1241_v37, 0.0  ;;  %v2550_v3 = vsel %vm2501_vm15, %v1248_v54, 0.0 }
0x14d4   :  { %1363 = vperm.xlu1 %1910, %v2488_v1   ;;  %1366 = vperm.xlu2 %1912, %v2491_v45  }
0x14d5   :  { %1372 = vperm.xlu0 %1911, %v2495_v6  }
0x14dc   :  { %1369 = vperm.xlu1 %1910, %v2506_v13   ;;  %1375 = vperm.xlu2 %1912, %v2509_v29  }
0x14dd   :  { %1540 = vperm.xlu0 %1911, %v2514_v27  }
0x14e4   :  { %1546 = vperm.xlu1 %1910, %v2520_v62   ;;  %1543 = vperm.xlu2 %1912, %v2524_v2  }
0x14e5   :  { %1549 = vperm.xlu0 %1911, %v2529_v56  }
0x14ec   :  { %1555 = vperm.xlu1 %1910, %v2535_v11   ;;  %1552 = vperm.xlu2 %1912, %v2539_v4  }
0x14ed   :  { %1558 = vperm.xlu0 %1911, %v2544_v10  }
0x14f4   :  { %1561 = vperm.xlu1 %1910, %v2550_v3  }
0x150b   :  { %v1127_v19 = vpop.xlane.xlu0 %1126 }
0x150c   :  { %v1128_v21 = vcvt.f32.s32 %v1127_v19 }
0x150e   :  { %v1131_v22 = vadd.s32 %v1130_v20, %v1128_v21 }
0x1510   :  { %vm1186_vm1 = vcmp.ne.s32.totalorder %v1131_v22, 0 }
0x1511   :  { %v2555_v23 = vsel %vm1186_vm1, %v2471_v39, 0.0  ;;  %v2558_v24 = vsel %vm1186_vm1, %v1255_v5, 0.0  ;;  %v2562_v7 = vsel %vm1186_vm1, %v2469_v38, 0.0  ;;  %vm2569_vm2 = vmxor %vm1186_vm1, %vm2114_vm14  ;;  %v2578_v25 = vsel %vm1186_vm1, %v1269_v8, 0.0 }
0x1512   :  { %1390 = vperm.xlu0 %1911, %v2555_v23   ;;  %1378 = vperm.xlu1 %1910, %v2558_v24   ;;  %v2575_v15 = vsel %vm2569_vm2, %v1255_v5, 0.0  ;;  %v2582_v26 = vsel %vm1186_vm1, %v1276_v12, 0.0  ;;  %v2588_v30 = vsel %vm2569_vm2, %v1269_v8, 0.0  ;;  %v2591_v31 = vsel %vm1186_vm1, %v1290_v28, 0.0 }
0x1513   :  { %1381 = vperm.xlu2 %1912, %v2562_v7   ;;  %v2594_v32 = vsel %vm1186_vm1, %v1297_v16, 0.0  ;;  %v2601_v33 = vsel %vm2569_vm2, %v1290_v28, 0.0  ;;  %v2605_v34 = vsel %vm2569_vm2, %v1276_v12, 0.0  ;;  %v2610_v35 = vsel %vm2569_vm2, %v2469_v38, 0.0 }
0x1514   :  { %v2617_v36 = vsel %vm1186_vm1, %v2473_v40, 0.0  ;;  %v2621_v37 = vsel %vm2569_vm2, %v1297_v16, 0.0  ;;  %v2626_v42 = vsel %vm2569_vm2, %v2471_v39, 0.0  ;;  %v2634_v43 = vsel %vm2569_vm2, %v2473_v40, 0.0 }
0x151a   :  { %1564 = vperm.xlu0 %1911, %v2575_v15   ;;  %1384 = vperm.xlu1 %1910, %v2578_v25  }
0x151b   :  { %1387 = vperm.xlu2 %1912, %v2582_v26  }
0x1522   :  { %1570 = vperm.xlu0 %1911, %v2588_v30   ;;  %1393 = vperm.xlu1 %1910, %v2591_v31  }
0x1523   :  { %1396 = vperm.xlu2 %1912, %v2594_v32  }
0x1526   :  { %v1361_v38 = vpop.permute.xlu2 %1360 }
0x1527   :  { %v1403_v51 = vperm.slane %v1361_v38, %v2214_v17 }
0x152a   :  { %1579 = vperm.xlu0 %1911, %v2601_v33   ;;  %1573 = vperm.xlu1 %1910, %v2605_v34  }
0x152b   :  { %1567 = vperm.xlu2 %1912, %v2610_v35  }
0x152e   :  { %v1367_v41 = vpop.permute.xlu2 %1366 }
0x152f   :  { %v1405_v59 = vperm.slane %v1367_v41, %v2214_v17 }
0x1532   :  { %1399 = vperm.xlu0 %1911, %v2617_v36   ;;  %1582 = vperm.xlu1 %1910, %v2621_v37  }
0x1533   :  { %1576 = vperm.xlu2 %1912, %v2626_v42  }
0x1536   :  { %v1376_v40 = vpop.permute.xlu2 %1375 }
0x1537   :  { %v1408_v20 = vperm.slane %v1376_v40, %v2214_v17 }
0x153b   :  { %1585 = vperm.xlu2 %1912, %v2634_v43  }
0x153e   :  { %v1355_v44 = vpop.permute.xlu1 %1354  ;;  %v1544_v18 = vpop.permute.xlu2 %1543 }
0x153f   :  { %v1358_v46 = vpop.permute.xlu0 %1357  ;;  %v1401_v47 = vperm.slane %v1355_v44, %v2214_v17  ;;  %v1588_v38 = vperm.slane %v1544_v18, %v2214_v17 }
0x1540   :  { %v1402_v39 = vperm.slane %v1358_v46, %v2214_v17 }
0x1542   :  { %v1417_v53 = vsel %vm221_vm12, %v1402_v39, %v1401_v47 }
0x1543   :  { %v1419_v57 = vsel %vm1418_vm0, %v1403_v51, %v1417_v53 }
0x1546   :  { %v1364_v48 = vpop.permute.xlu1 %1363 }
0x1547   :  { %v1373_v50 = vpop.permute.xlu0 %1372  ;;  %v1404_v55 = vperm.slane %v1364_v48, %v2214_v17  ;;  %v1553_v48 = vpop.permute.xlu2 %1552 }
0x1548   :  { %v1407_v16 = vperm.slane %v1373_v50, %v2214_v17  ;;  %v1591_v51 = vperm.slane %v1553_v48, %v2214_v17 }
0x1549   :  { %v1421_v0 = vsel %vm1420_vm3, %v1404_v55, %v1419_v57 }
0x154a   :  { %v1423_v5 = vsel %vm1422_vm4, %v1405_v59, %v1421_v0 }
0x154e   :  { %v1370_v58 = vpop.permute.xlu1 %1369 }
0x154f   :  { %v1541_v9 = vpop.permute.xlu0 %1540  ;;  %v1406_v54 = vperm.slane %v1370_v58, %v2214_v17 }
0x1550   :  { %v1587_v14 = vperm.slane %v1541_v9, %v2214_v17 }
0x1551   :  { %v1425_v12 = vsel %vm1424_vm6, %v1406_v54, %v1423_v5 }
0x1552   :  { %v1427_v19 = vsel %vm1426_vm7, %v1407_v16, %v1425_v12  ;;  %v1603_v46 = vsel %vm221_vm12, %v1588_v38, %v1587_v14 }
0x1553   :  { %v1429_v8 = vsel %vm1428_vm8, %v1408_v20, %v1427_v19 }
0x1554   :  { %v1439_v44 = vsel %vm1172_vm5, %v1429_v8, 0.0 }
0x1556   :  { %v1547_v21 = vpop.permute.xlu1 %1546 }
0x1557   :  { %v1550_v22 = vpop.permute.xlu0 %1549  ;;  %v1589_v28 = vperm.slane %v1547_v21, %v2214_v17 }
0x1558   :  { %v1590_v41 = vperm.slane %v1550_v22, %v2214_v17 }
0x1559   :  { %v1604_v39 = vsel %vm1418_vm0, %v1589_v28, %v1603_v46 }
0x155a   :  { %v1605_v50 = vsel %vm1420_vm3, %v1590_v41, %v1604_v39 }
0x155b   :  { %v1606_v57 = vsel %vm1422_vm4, %v1591_v51, %v1605_v50 }
0x155c   :  { %1440 = vadd.xlane.f32.xlu1 %v1439_v44 }
0x155e   :  { %v1556_v47 = vpop.permute.xlu1 %1555 }
0x155f   :  { %v1559_v53 = vpop.permute.xlu0 %1558  ;;  %v1592_v55 = vperm.slane %v1556_v47, %v2214_v17 }
0x1560   :  { %v1593_v40 = vperm.slane %v1559_v53, %v2214_v17 }
0x1561   :  { %v1607_v0 = vsel %vm1424_vm6, %v1592_v55, %v1606_v57 }
0x1562   :  { %v1608_v9 = vsel %vm1426_vm7, %v1593_v40, %v1607_v0 }
0x1566   :  { %v1562_v58 = vpop.permute.xlu1 %1561 }
0x1567   :  { %v1594_v59 = vperm.slane %v1562_v58, %v2214_v17 }
0x1569   :  { %v1609_v54 = vsel %vm1428_vm8, %v1594_v59, %v1608_v9 }
0x156a   :  { %v1619_v5 = vsel %vm1172_vm5, %v1609_v54, 0.0 }
0x156b   :  { %1620 = vadd.xlane.f32.xlu0 %v1619_v5 }
0x156d   :  { %v1382_v12 = vpop.permute.xlu2 %1381 }
0x156e   :  { %v1410_v46 = vperm.slane %v1382_v12, %v2214_v17 }
0x1575   :  { %v1388_v16 = vpop.permute.xlu2 %1387 }
0x1576   :  { %v1412_v40 = vperm.slane %v1388_v16, %v2214_v17 }
0x157d   :  { %v1397_v20 = vpop.permute.xlu2 %1396 }
0x1584   :  { %v1391_v18 = vpop.permute.xlu0 %1390  ;;  %v1379_v19 = vpop.permute.xlu1 %1378 }
0x1585   :  { %v1568_v8 = vpop.permute.xlu2 %1567  ;;  %v1409_v38 = vperm.slane %v1379_v19, %v2214_v17  ;;  %v1413_v54 = vperm.slane %v1391_v18, %v2214_v17 }
0x1586   :  { %v1596_v50 = vperm.slane %v1568_v8, %v2214_v17  ;;  %v1415_v8 = vperm.slane %v1397_v20, %v2214_v17 }
0x1587   :  { %v1430_v47 = vsel %vm221_vm12, %v1410_v46, %v1409_v38 }
0x158c   :  { %v1565_v21 = vpop.permute.xlu0 %1564  ;;  %v1385_v22 = vpop.permute.xlu1 %1384 }
0x158d   :  { %v1411_v44 = vperm.slane %v1385_v22, %v2214_v17  ;;  %v1577_v41 = vpop.permute.xlu2 %1576  ;;  %v1595_v39 = vperm.slane %v1565_v21, %v2214_v17 }
0x158e   :  { %v1599_v12 = vperm.slane %v1577_v41, %v2214_v17 }
0x158f   :  { %v1431_v53 = vsel %vm1418_vm0, %v1411_v44, %v1430_v47  ;;  %v1610_v0 = vsel %vm221_vm12, %v1596_v50, %v1595_v39 }
0x1590   :  { %v1432_v58 = vsel %vm1420_vm3, %v1412_v40, %v1431_v53 }
0x1591   :  { %v1433_v19 = vsel %vm1422_vm4, %v1413_v54, %v1432_v58 }
0x1594   :  { %v1571_v14 = vpop.permute.xlu0 %1570  ;;  %v1394_v28 = vpop.permute.xlu1 %1393 }
0x1595   :  { %v1597_v48 = vperm.slane %v1571_v14, %v2214_v17  ;;  %v1414_v9 = vperm.slane %v1394_v28, %v2214_v17  ;;  %v1586_v21 = vpop.permute.xlu2 %1585 }
0x1596   :  { %v1602_v46 = vperm.slane %v1586_v21, %v2214_v17 }
0x1597   :  { %v1611_v59 = vsel %vm1418_vm0, %v1597_v48, %v1610_v0  ;;  %v1434_v16 = vsel %vm1424_vm6, %v1414_v9, %v1433_v19 }
0x1598   :  { %v1435_v41 = vsel %vm1426_vm7, %v1415_v8, %v1434_v16 }
0x159c   :  { %v1580_v55 = vpop.permute.xlu0 %1579  ;;  %v1574_v51 = vpop.permute.xlu1 %1573 }
0x159d   :  { %v1598_v57 = vperm.slane %v1574_v51, %v2214_v17  ;;  %v1600_v14 = vperm.slane %v1580_v55, %v2214_v17 }
0x159f   :  { %v1612_v5 = vsel %vm1420_vm3, %v1598_v57, %v1611_v59 }
0x15a0   :  { %v1613_v22 = vsel %vm1422_vm4, %v1599_v12, %v1612_v5 }
0x15a1   :  { %v1614_v39 = vsel %vm1424_vm6, %v1600_v14, %v1613_v22 }
0x15a4   :  { %v1400_v38 = vpop.permute.xlu0 %1399  ;;  %v1583_v44 = vpop.permute.xlu1 %1582 }
0x15a5   :  { %v1416_v28 = vperm.slane %v1400_v38, %v2214_v17  ;;  %v1601_v18 = vperm.slane %v1583_v44, %v2214_v17 }
0x15a7   :  { %v1436_v47 = vsel %vm1428_vm8, %v1416_v28, %v1435_v41  ;;  %v1615_v48 = vsel %vm1426_vm7, %v1601_v18, %v1614_v39 }
0x15a8   :  { %v1442_v20 = vsel %vm1172_vm5, %v1436_v47, 0.0  ;;  %v1616_v50 = vsel %vm1428_vm8, %v1602_v46, %v1615_v48 }
0x15a9   :  { %1443 = vadd.xlane.f32.xlu2 %v1442_v20  ;;  %v1622_v53 = vsel %vm1172_vm5, %v1616_v50, 0.0 }
0x15aa   :  { %1623 = vadd.xlane.f32.xlu1 %v1622_v53 }
0x15cf   :  { %v1441_v55 = vpop.xlane.xlu1 %1440 }
0x15d0   :  { %vm1445_vm9 = vcmp.gt.f32.partialorder %v1441_v55, 0.0 }
0x15d1   :  { %v1447_v51 = vsel %vm1445_vm9, %v1441_v55, 1.0 }
0x15d2   :  { %2047 = vrcp.f32 %v1447_v51 }
0x15d8   :  { %v2048_v0 = vpop.eup %2047 }
0x15d9   :  { %v1455_v58 = vperm.slane %v2048_v0, 2  ;;  %v1454_v59 = vperm.slane %v2048_v0, 1  ;;  %v1453_v9 = vperm.slane %v2048_v0, 0  ;;  %v1459_v47 = vperm.slane %v2048_v0, 6 }
0x15db   :  { %v1487_v21 = vmul.f32 %v1455_v58, %v2476_v60  ;;  %v1486_v16 = vmul.f32 %v1454_v59, %v2482_v63  ;;  %v1485_v14 = vmul.f32 %v1453_v9, %v2479_v61  ;;  %v1457_v60 = vperm.slane %v2048_v0, 4 }
0x15dc   :  { %v1456_v63 = vperm.slane %v2048_v0, 3 }
0x15dd   :  { %v1489_v48 = vmul.f32 %v1457_v60, %v2491_v45 }
0x15de   :  { %v1621_v40 = vpop.xlane.xlu0 %1620  ;;  %v1488_v20 = vmul.f32 %v1456_v63, %v2488_v1 }
0x15df   :  { %vm1625_vm10 = vcmp.gt.f32.partialorder %v1621_v40, 0.0 }
0x15e0   :  { %v1627_v57 = vsel %vm1625_vm10, %v1621_v40, 1.0 }
0x15e1   :  { %2049 = vrcp.f32 %v1627_v57  ;;  %v1460_v57 = vperm.slane %v2048_v0, 7 }
0x15e7   :  { %v2050_v54 = vpop.eup %2049 }
0x15e8   :  { %v1635_v5 = vperm.slane %v2050_v54, 2  ;;  %v1634_v12 = vperm.slane %v2050_v54, 1  ;;  %v1633_v19 = vperm.slane %v2050_v54, 0  ;;  %v1639_v44 = vperm.slane %v2050_v54, 6 }
0x15e9   :  { %v1637_v41 = vperm.slane %v2050_v54, 4  ;;  %v1636_v39 = vperm.slane %v2050_v54, 3  ;;  %v1640_v55 = vperm.slane %v2050_v54, 7  ;;  %v1638_v40 = vperm.slane %v2050_v54, 5 }
0x15ea   :  { %v1667_v22 = vmul.f32 %v1635_v5, %v2520_v62  ;;  %v1666_v8 = vmul.f32 %v1634_v12, %v2524_v2  ;;  %v1665_v38 = vmul.f32 %v1633_v19, %v2514_v27  ;;  %v1671_v62 = vmul.f32 %v1639_v44, %v2544_v10 }
0x15eb   :  { %v1669_v2 = vmul.f32 %v1637_v41, %v2539_v4  ;;  %v1668_v61 = vmul.f32 %v1636_v39, %v2529_v56  ;;  %v1491_v27 = vmul.f32 %v1459_v47, %v2495_v6  ;;  %v1458_v10 = vperm.slane %v2048_v0, 5 }
0x15ec   :  { %v1683_v28 = vadd.f32 %v1667_v22, %v1487_v21  ;;  %v1682_v18 = vadd.f32 %v1666_v8, %v1486_v16  ;;  %v1681_v46 = vadd.f32 %v1665_v38, %v1485_v14  ;;  %v1672_v4 = vmul.f32 %v1640_v55, %v2550_v3 }
0x15ed   :  { %v1687_v50 = vadd.f32 %v1671_v62, %v1491_v27  ;;  %v1685_v53 = vadd.f32 %v1669_v2, %v1489_v48  ;;  %v1684_v51 = vadd.f32 %v1668_v61, %v1488_v20  ;;  %v1670_v56 = vmul.f32 %v1638_v40, %v2535_v11 }
0x15ee   :  { %1712 = vperm.xlu1 %1910, %v1683_v28   ;;  %1709 = vperm.xlu2 %1912, %v1682_v18   ;;  %v1492_v6 = vmul.f32 %v1460_v57, %v2509_v29  ;;  %v1490_v45 = vmul.f32 %v1458_v10, %v2506_v13 }
0x15ef   :  { %1706 = vperm.xlu0 %1911, %v1681_v46  }
0x15f0   :  { %v1688_v58 = vadd.f32 %v1672_v4, %v1492_v6  ;;  %v1686_v1 = vadd.f32 %v1670_v56, %v1490_v45 }
0x15f6   :  { %1724 = vperm.xlu1 %1910, %v1687_v50   ;;  %1718 = vperm.xlu2 %1912, %v1685_v53  }
0x15f7   :  { %1715 = vperm.xlu0 %1911, %v1684_v51  }
0x15fe   :  { %1727 = vperm.xlu2 %1912, %v1688_v58  }
0x15ff   :  { %1721 = vperm.xlu0 %1911, %v1686_v1  }
0x161c   :  { %v1444_v59 = vpop.xlane.xlu2 %1443 }
0x161d   :  { %vm1446_vm11 = vcmp.gt.f32.partialorder %v1444_v59, 0.0  ;;  %v1624_v9 = vpop.xlane.xlu1 %1623 }
0x161e   :  { %v1448_v54 = vsel %vm1446_vm11, %v1444_v59, 1.0  ;;  %vm1626_vm14 = vcmp.gt.f32.partialorder %v1624_v9, 0.0 }
0x161f   :  { %2051 = vrcp.f32 %v1448_v54  ;;  %v1628_v5 = vsel %vm1626_vm14, %v1624_v9, 1.0 }
0x1620   :  { %2053 = vrcp.f32 %v1628_v5 }
0x1625   :  { %v2052_v0 = vpop.eup %2051 }
0x1626   :  { %v2054_v3 = vpop.eup %2053  ;;  %v1463_v12 = vperm.slane %v2052_v0, 2  ;;  %v1462_v11 = vperm.slane %v2052_v0, 1  ;;  %v1461_v19 = vperm.slane %v2052_v0, 0  ;;  %v1466_v28 = vperm.slane %v2052_v0, 5 }
0x1627   :  { %v1643_v29 = vperm.slane %v2054_v3, 2  ;;  %v1642_v21 = vperm.slane %v2054_v3, 1  ;;  %v1641_v13 = vperm.slane %v2054_v3, 0  ;;  %v1646_v18 = vperm.slane %v2054_v3, 5 }
0x1628   :  { %v1495_v16 = vmul.f32 %v1463_v12, %v2578_v25  ;;  %v1494_v22 = vmul.f32 %v1462_v11, %v2562_v7  ;;  %v1493_v8 = vmul.f32 %v1461_v19, %v2558_v24  ;;  %v1465_v46 = vperm.slane %v2052_v0, 4 }
0x1629   :  { %v1675_v14 = vmul.f32 %v1643_v29, %v2588_v30  ;;  %v1674_v38 = vmul.f32 %v1642_v21, %v2610_v35  ;;  %v1673_v44 = vmul.f32 %v1641_v13, %v2575_v15  ;;  %v1645_v60 = vperm.slane %v2054_v3, 4 }
0x162a   :  { %v1464_v63 = vperm.slane %v2052_v0, 3  ;;  %v1644_v62 = vperm.slane %v2054_v3, 3  ;;  %v1498_v24 = vmul.f32 %v1466_v28, %v2591_v31  ;;  %v1678_v7 = vmul.f32 %v1646_v18, %v2601_v33 }
0x162b   :  { %v1691_v41 = vadd.f32 %v1675_v14, %v1495_v16  ;;  %v1690_v39 = vadd.f32 %v1674_v38, %v1494_v22  ;;  %v1689_v47 = vadd.f32 %v1673_v44, %v1493_v8  ;;  %v1497_v25 = vmul.f32 %v1465_v46, %v2555_v23 }
0x162c   :  { %v1677_v15 = vmul.f32 %v1645_v60, %v2626_v42  ;;  %v1496_v30 = vmul.f32 %v1464_v63, %v2582_v26  ;;  %v1676_v35 = vmul.f32 %v1644_v62, %v2605_v34  ;;  %v1694_v2 = vadd.f32 %v1678_v7, %v1498_v24 }
0x162d   :  { %1782 = vperm.xlu2 %1912, %v1691_v41   ;;  %1779 = vperm.xlu1 %1910, %v1690_v39   ;;  %v1468_v27 = vperm.slane %v2052_v0, 7  ;;  %v1648_v48 = vperm.slane %v2054_v3, 7  ;;  %v1467_v50 = vperm.slane %v2052_v0, 6  ;;  %v1647_v53 = vperm.slane %v2054_v3, 6 }
0x162e   :  { %1776 = vperm.xlu0 %1911, %v1689_v47   ;;  %v1693_v61 = vadd.f32 %v1677_v15, %v1497_v25  ;;  %v1692_v20 = vadd.f32 %v1676_v35, %v1496_v30 }
0x162f   :  { %v1500_v31 = vmul.f32 %v1468_v27, %v2617_v36  ;;  %v1680_v23 = vmul.f32 %v1648_v48, %v2634_v43  ;;  %v1499_v33 = vmul.f32 %v1467_v50, %v2594_v32  ;;  %v1679_v26 = vmul.f32 %v1647_v53, %v2621_v37 }
0x1631   :  { %v1696_v42 = vadd.f32 %v1680_v23, %v1500_v31  ;;  %v1695_v34 = vadd.f32 %v1679_v26, %v1499_v33 }
0x1635   :  { %1791 = vperm.xlu2 %1912, %v1694_v2   ;;  %1788 = vperm.xlu1 %1910, %v1693_v61  }
0x1636   :  { %1785 = vperm.xlu0 %1911, %v1692_v20  }
0x163d   :  { %1797 = vperm.xlu1 %1910, %v1696_v42  }
0x163e   :  { %1794 = vperm.xlu0 %1911, %v1695_v34  }
0x1648   :  { %v1710_v55 = vpop.permute.xlu2 %1709 }
0x1649   :  { %v1730_v56 = vperm.slane %v1710_v55, %v2214_v17 }
0x1650   :  { %v1719_v57 = vpop.permute.xlu2 %1718 }
0x1651   :  { %v1733_v58 = vperm.slane %v1719_v57, %v2214_v17 }
0x1658   :  { %v1728_v1 = vpop.permute.xlu2 %1727 }
0x1659   :  { %v1736_v0 = vperm.slane %v1728_v1, %v2214_v17 }
0x1660   :  { %v1713_v40 = vpop.permute.xlu1 %1712 }
0x1661   :  { %v1707_v51 = vpop.permute.xlu0 %1706  ;;  %v1731_v36 = vperm.slane %v1713_v40, %v2214_v17 }
0x1662   :  { %v1729_v10 = vperm.slane %v1707_v51, %v2214_v17 }
0x1664   :  { %v1737_v43 = vsel %vm221_vm12, %v1730_v56, %v1729_v10 }
0x1665   :  { %v1738_v37 = vsel %vm1418_vm0, %v1731_v36, %v1737_v43 }
0x1668   :  { %v1725_v45 = vpop.permute.xlu1 %1724 }
0x1669   :  { %v1716_v4 = vpop.permute.xlu0 %1715  ;;  %v1735_v54 = vperm.slane %v1725_v45, %v2214_v17 }
0x166a   :  { %v1732_v32 = vperm.slane %v1716_v4, %v2214_v17 }
0x166c   :  { %v1739_v6 = vsel %vm1420_vm3, %v1732_v32, %v1738_v37 }
0x166d   :  { %v1740_v5 = vsel %vm1422_vm4, %v1733_v58, %v1739_v6 }
0x1671   :  { %v1722_v59 = vpop.permute.xlu0 %1721 }
0x1672   :  { %v1734_v9 = vperm.slane %v1722_v59, %v2214_v17 }
0x1674   :  { %v1741_v3 = vsel %vm1424_vm6, %v1734_v9, %v1740_v5 }
0x1675   :  { %v1742_v12 = vsel %vm1426_vm7, %v1735_v54, %v1741_v3 }
0x1676   :  { %v1743_v11 = vsel %vm1428_vm8, %v1736_v0, %v1742_v12 }
0x1677   :  { %1896 = vmatmul.msk.f32.vlgmr.msrb.gmra.mxu2 %vm1172_vm5, %v1743_v11 }
0x1687   :  { %v1783_v21 = vpop.permute.xlu2 %1782 }
0x1688   :  { %v1801_v38 = vperm.slane %v1783_v21, %v2214_v17 }
0x168f   :  { %v1792_v41 = vpop.permute.xlu2 %1791 }
0x1690   :  { %v1804_v60 = vperm.slane %v1792_v41, %v2214_v17 }
0x169f   :  { %v1780_v19 = vpop.permute.xlu1 %1779 }
0x16a0   :  { %v1777_v29 = vpop.permute.xlu0 %1776  ;;  %v1800_v16 = vperm.slane %v1780_v19, %v2214_v17 }
0x16a1   :  { %v1799_v13 = vperm.slane %v1777_v29, %v2214_v17 }
0x16a3   :  { %v1807_v8 = vsel %vm221_vm12, %v1800_v16, %v1799_v13 }
0x16a4   :  { %v1808_v28 = vsel %vm1418_vm0, %v1801_v38, %v1807_v8 }
0x16a7   :  { %v1789_v22 = vpop.permute.xlu1 %1788 }
0x16a8   :  { %v1786_v14 = vpop.permute.xlu0 %1785  ;;  %v1803_v18 = vperm.slane %v1789_v22, %v2214_v17 }
0x16a9   :  { %v1802_v44 = vperm.slane %v1786_v14, %v2214_v17 }
0x16ab   :  { %v1809_v46 = vsel %vm1420_vm3, %v1802_v44, %v1808_v28 }
0x16ac   :  { %v1810_v39 = vsel %vm1422_vm4, %v1803_v18, %v1809_v46 }
0x16ad   :  { %v1811_v7 = vsel %vm1424_vm6, %v1804_v60, %v1810_v39 }
0x16af   :  { %v1798_v47 = vpop.permute.xlu1 %1797 }
0x16b0   :  { %v1795_v63 = vpop.permute.xlu0 %1794  ;;  %v1806_v62 = vperm.slane %v1798_v47, %v2214_v17 }
0x16b1   :  { %v1805_v24 = vperm.slane %v1795_v63, %v2214_v17 }
0x16b3   :  { %v1812_v25 = vsel %vm1426_vm7, %v1805_v24, %v1811_v7 }
0x16b4   :  { %v1813_v15 = vsel %vm1428_vm8, %v1806_v62, %v1812_v25 }
0x16b5   :  { %1897 = vmatmul.msk.f32.vlgmr.msra.gmra.mxu0 %vm1172_vm5, %v1813_v15 }
0x16fa   :  { %v1764_v30 = vpop.f32.mrf.mxu2 }
0x16fb   :  { %v1765_v35 = vadd.f32 %v1764_v30, %v2432_v49 }
0x16fd   :  { %1837 = vst.msk [vmem:[#allocation5] sm:$0xff] %vm114_vm13, %v1765_v35 }
0x1732   :  { %v1834_v17 = vpop.f32.mrf.mxu0 }
0x1733   :  { %v1835_v2 = vadd.f32 %v1834_v17, %v2434_v52 }
0x1735   :  { %1838 = vst.msk [vmem:[#allocation5 + $0x8] sm:$0xff] %vm114_vm13, %v1835_v2 }
0x1736   :  { %1851 = dma.vmem_to_hbm [thread:$0]  %s1844_s1, 256, %s1846_s11, [#allocation4], %s2108_s29, %s2108_s29, %s2109_s30  }
0x1737   :  { %2105 = dma.done.wait [#allocation4], 256  }
0x1738   :  { %2106 = vsyncadd [#allocation4], 4294967040 }
0x1739   :  { %1860 = vsyncpa [#allocation3], 1 }
0x173a   :  { %1861 = vsyncpa [#allocation4], 1 }

</bundles_post_ra>
